<compile_context>
chip_gen: v5e
topology: v5e:2x2
jax: 0.10.0
libtpu: 0.0.40
codegen_flags: <defaults>
</compile_context>

<pallas_src>
import functools
import math

import jax
import jax.numpy as jnp
from jax.experimental import pallas as pl
from jax.experimental.pallas import tpu as pltpu

_PAR = "parallel"
_ARB = "arbitrary"


def _default_seq_tile():
    # v5e/v6e (128 MiB physical VMEM) -> 512-row activation tiles; v7x (64 MiB) -> 256.
    try:
        vmem = getattr(pltpu.get_tpu_info(), "vmem_capacity_bytes", 0)
        return 512 if vmem >= (96 << 20) else 256
    except Exception:
        return 256


_SEQ_TILE = _default_seq_tile()


def _pick_tile(dim, desired, mult=8):
    """Largest multiple-of-`mult` divisor of `dim` that is <= desired (else full dim)."""
    if dim <= desired:
        return dim
    start = desired - desired % mult
    for t in range(start, 0, -mult):
        if dim % t == 0:
            return t
    return dim


def _nbytes(shape, dtype):
    return int(math.prod(shape)) * jnp.dtype(dtype).itemsize


def _mosaic(dim_sem, block_bytes, scratch_bytes=0):
    # Double-buffered input/output blocks + scratch + slack, clamped to a sane range.
    need = 2 * int(block_bytes) + int(scratch_bytes) + (8 << 20)
    limit = int(min(max(need, 32 << 20), 100 << 20))
    return pltpu.CompilerParams(dimension_semantics=dim_sem, vmem_limit_bytes=limit)


# ---------------------------------------------------------------------------
# Kernels
# ---------------------------------------------------------------------------
def _embed_kernel(src_ref, pos_ref, w_ref, b_ref, o_ref, *, scale):
    # (src * sqrt(hid_dim) + pos_embedding) @ W + b      (dropout = identity)
    x = src_ref[0] * scale + pos_ref[...]                           # f32 (ts, Din)
    y = jnp.dot(x.astype(w_ref.dtype), w_ref[...],
                preferred_element_type=jnp.float32)
    o_ref[0] = (y + b_ref[...]).astype(o_ref.dtype)


def _qkv_kernel(x_ref, w_ref, b_ref, o_ref, acc_ref, *, hid_dim):
    # Fused Q|K|V projection: one wide (ts, tk) @ (tk, 3H) matmul per K step.
    k = pl.program_id(2)

    @pl.when(k == 0)
    def _():
        acc_ref[...] = jnp.zeros_like(acc_ref)

    acc_ref[...] += jnp.dot(x_ref[0], w_ref[...],
                            preferred_element_type=jnp.float32)

    @pl.when(k == pl.num_programs(2) - 1)
    def _():
        qkv = acc_ref[...] + b_ref[...]                              # (ts, 3H) f32
        o_ref[0, 0] = qkv[:, :hid_dim].astype(o_ref.dtype)           # Q
        o_ref[0, 1] = qkv[:, hid_dim:2 * hid_dim].astype(o_ref.dtype)  # K
        o_ref[0, 2] = qkv[:, 2 * hid_dim:].astype(o_ref.dtype)       # V


def _attn_kernel(q_ref, k_ref, v_ref, m_ref, o_ref, *attn_refs,
                 n_heads, head_dim, inv_scale, exact_softmax):
    # One (batch, query-tile) per grid step; heads looped in-kernel.
    # Working set is (tq, S) per head -- the full (S, S) energy never exists.
    q = q_ref[0, 0]                                                  # (tq, H) bf16
    k = k_ref[0, 0]                                                  # (S,  H) bf16
    v = v_ref[0, 0]                                                  # (S,  H) bf16
    mask = m_ref[0]                                                  # (1,  S) f32

    ctx_parts = []
    for h in range(n_heads):                                         # static unroll
        sl = slice(h * head_dim, (h + 1) * head_dim)
        qh = q[:, sl] * inv_scale                                    # scale folded into Q
        # contract the dh axes directly -> no k.T relayout through the XLU
        e = jax.lax.dot_general(qh, k[:, sl], (((1,), (1,)), ((), ())),
                                preferred_element_type=jnp.float32)  # (tq, S)
        e = jnp.where(mask > 0.0, e, -1e10)                          # key-mask bcast
        m = jnp.max(e, axis=-1, keepdims=True)
        p = jnp.exp(e - m)
        s = jnp.sum(p, axis=-1, keepdims=True)
        if exact_softmax:
            attn = p / s                                             # exact (returned path)
        else:
            attn = p * pl.reciprocal(s, approx=True)                 # EUP, free slot
        ctx_parts.append(jnp.dot(attn.astype(v.dtype), v[:, sl],
                                 preferred_element_type=jnp.float32))
        if attn_refs:                                                # last layer only
            attn_refs[0][0, h] = attn.astype(attn_refs[0].dtype)

    # single lane-dense (tq, H) store
    o_ref[0] = jnp.concatenate(ctx_parts, axis=-1).astype(o_ref.dtype)


def _proj_residual_ln_kernel(ctx_ref, w_ref, b_ref, res_ref, g_ref, be_ref,
                             o_ref, *, eps):
    # LayerNorm(residual + ctx @ Wo + bo), one K=H matmul.
    x = jnp.dot(ctx_ref[0], w_ref[...], preferred_element_type=jnp.float32)
    x = x + b_ref[...] + res_ref[0].astype(jnp.float32)
    mean = jnp.mean(x, axis=-1, keepdims=True)
    var = jnp.mean((x - mean) ** 2, axis=-1, keepdims=True)
    y = (x - mean) * jax.lax.rsqrt(var + eps) * g_ref[...] + be_ref[...]
    o_ref[0] = y.astype(o_ref.dtype)


def _ffn_residual_ln_kernel(x_ref, w1_ref, b1_ref, w2_ref, b2_ref, g_ref,
                            be_ref, o_ref, acc_ref, *, eps):
    # LayerNorm(x + relu(x @ W1 + b1) @ W2 + b2); pf dim accumulated over grid.
    p = pl.program_id(2)

    @pl.when(p == 0)
    def _():
        acc_ref[...] = jnp.zeros_like(acc_ref)

    h = jnp.dot(x_ref[0], w1_ref[...], preferred_element_type=jnp.float32)
    h = jnp.maximum(h + b1_ref[...], 0.0)
    acc_ref[...] += jnp.dot(h.astype(w2_ref.dtype), w2_ref[...],
                            preferred_element_type=jnp.float32)

    @pl.when(p == pl.num_programs(2) - 1)
    def _():
        x = acc_ref[...] + b2_ref[...] + x_ref[0].astype(jnp.float32)
        mean = jnp.mean(x, axis=-1, keepdims=True)
        var = jnp.mean((x - mean) ** 2, axis=-1, keepdims=True)
        y = (x - mean) * jax.lax.rsqrt(var + eps) * g_ref[...] + be_ref[...]
        o_ref[0] = y.astype(o_ref.dtype)


# ---------------------------------------------------------------------------
# Pallas wrappers
# ---------------------------------------------------------------------------
def embed_linear(src, pos, w, b, *, scale):
    # TODO(synk): D_in is usually << 128 (lane-sparse K); run once per forward
    # so it is kept as a Pallas kernel for completeness rather than padded.
    B, S, D_in = src.shape
    H = w.shape[1]
    ts = _pick_tile(S, _SEQ_TILE)
    blk = (_nbytes((1, ts, D_in), src.dtype) + _nbytes((ts, D_in), pos.dtype)
           + _nbytes((D_in, H), w.dtype) + _nbytes((1, H), b.dtype)
           + _nbytes((1, ts, H), jnp.bfloat16))
    cost = pl.CostEstimate(flops=2 * B * S * D_in * H + 2 * B * S * D_in,
                           transcendentals=0,
                           bytes_accessed=src.size * 4 + pos.size * 4
                           + w.size * 2 + B * S * H * 2)
    return pl.pallas_call(
        functools.partial(_embed_kernel, scale=scale),
        out_shape=jax.ShapeDtypeStruct((B, S, H), jnp.bfloat16),
        grid=(B, S // ts),
        in_specs=[
            pl.BlockSpec((1, ts, D_in), lambda b_, s_: (b_, s_, 0)),
            pl.BlockSpec((ts, D_in), lambda b_, s_: (s_, 0)),
            pl.BlockSpec((D_in, H), lambda b_, s_: (0, 0)),
            pl.BlockSpec((1, H), lambda b_, s_: (0, 0)),
        ],
        out_specs=pl.BlockSpec((1, ts, H), lambda b_, s_: (b_, s_, 0)),
        compiler_params=_mosaic((_PAR, _PAR), blk),
        cost_estimate=cost,
    )(src, pos, w, b)


def qkv_projection(x, wqkv, bqkv):
    B, S, H = x.shape
    ts = _pick_tile(S, _SEQ_TILE)
    tk = _pick_tile(H, 512, mult=128)
    blk = (_nbytes((1, ts, tk), x.dtype) + _nbytes((tk, 3 * H), wqkv.dtype)
           + _nbytes((1, 3 * H), bqkv.dtype) + _nbytes((1, 3, ts, H), jnp.bfloat16))
    scratch = _nbytes((ts, 3 * H), jnp.float32)
    cost = pl.CostEstimate(flops=2 * B * S * H * 3 * H, transcendentals=0,
                           bytes_accessed=x.size * 2 + wqkv.size * 2
                           + B * S * 3 * H * 2)
    return pl.pallas_call(
        functools.partial(_qkv_kernel, hid_dim=H),
        out_shape=jax.ShapeDtypeStruct((B, 3, S, H), jnp.bfloat16),
        grid=(B, S // ts, H // tk),
        in_specs=[
            pl.BlockSpec((1, ts, tk), lambda b_, s_, k_: (b_, s_, k_)),
            pl.BlockSpec((tk, 3 * H), lambda b_, s_, k_: (k_, 0)),
            pl.BlockSpec((1, 3 * H), lambda b_, s_, k_: (0, 0)),
        ],
        out_specs=pl.BlockSpec((1, 3, ts, H), lambda b_, s_, k_: (b_, 0, s_, 0)),
        scratch_shapes=[pltpu.VMEM((ts, 3 * H), jnp.float32)],
        compiler_params=_mosaic((_PAR, _PAR, _ARB), blk, scratch),
        cost_estimate=cost,
    )(x, wqkv, bqkv)


def attention(qkv, mask, n_heads, *, with_attn):
    B, _, S, H = qkv.shape
    dh = H // n_heads
    tq = _pick_tile(S, 256)
    ctx_shape = jax.ShapeDtypeStruct((B, S, H), jnp.bfloat16)
    ctx_spec = pl.BlockSpec((1, tq, H), lambda b_, q_: (b_, q_, 0))
    blk = (_nbytes((1, 1, tq, H), qkv.dtype) + 2 * _nbytes((1, 1, S, H), qkv.dtype)
           + _nbytes((1, 1, S), mask.dtype) + _nbytes((1, tq, H), jnp.bfloat16))
    flops = 4 * B * S * S * H
    trans = B * n_heads * S * S
    bytes_acc = 4 * B * S * H * 2 + B * S * 4
    if with_attn:
        out_shape = (ctx_shape,
                     jax.ShapeDtypeStruct((B, n_heads, S, S), jnp.float32))
        out_specs = (ctx_spec,
                     pl.BlockSpec((1, n_heads, tq, S), lambda b_, q_: (b_, 0, q_, 0)))
        blk += _nbytes((1, n_heads, tq, S), jnp.float32)
        bytes_acc += B * n_heads * S * S * 4
    else:
        out_shape = ctx_shape
        out_specs = ctx_spec
    cost = pl.CostEstimate(flops=flops, transcendentals=trans,
                           bytes_accessed=bytes_acc)
    return pl.pallas_call(
        functools.partial(_attn_kernel, n_heads=n_heads, head_dim=dh,
                          inv_scale=1.0 / math.sqrt(dh), exact_softmax=with_attn),
        out_shape=out_shape,
        grid=(B, S // tq),
        in_specs=[
            pl.BlockSpec((1, 1, tq, H), lambda b_, q_: (b_, 0, q_, 0)),   # Q tile
            pl.BlockSpec((1, 1, S, H), lambda b_, q_: (b_, 1, 0, 0)),     # K (resident)
            pl.BlockSpec((1, 1, S, H), lambda b_, q_: (b_, 2, 0, 0)),     # V (resident)
            pl.BlockSpec((1, 1, S), lambda b_, q_: (b_, 0, 0)),           # key mask
        ],
        out_specs=out_specs,
        compiler_params=_mosaic((_PAR, _PAR), blk),
        cost_estimate=cost,
    )(qkv, qkv, qkv, mask)


def proj_residual_ln(ctx, wo, bo, residual, gamma, beta, *, eps=1e-5):
    B, S, H = ctx.shape
    ts = _pick_tile(S, _SEQ_TILE)
    blk = (3 * _nbytes((1, ts, H), jnp.bfloat16) + _nbytes((H, H), wo.dtype)
           + 3 * _nbytes((1, H), jnp.float32))
    cost = pl.CostEstimate(flops=2 * B * S * H * H + 10 * B * S * H,
                           transcendentals=B * S,
                           bytes_accessed=3 * B * S * H * 2 + H * H * 2)
    return pl.pallas_call(
        functools.partial(_proj_residual_ln_kernel, eps=eps),
        out_shape=jax.ShapeDtypeStruct((B, S, H), jnp.bfloat16),
        grid=(B, S // ts),
        in_specs=[
            pl.BlockSpec((1, ts, H), lambda b_, s_: (b_, s_, 0)),
            pl.BlockSpec((H, H), lambda b_, s_: (0, 0)),
            pl.BlockSpec((1, H), lambda b_, s_: (0, 0)),
            pl.BlockSpec((1, ts, H), lambda b_, s_: (b_, s_, 0)),
            pl.BlockSpec((1, H), lambda b_, s_: (0, 0)),
            pl.BlockSpec((1, H), lambda b_, s_: (0, 0)),
        ],
        out_specs=pl.BlockSpec((1, ts, H), lambda b_, s_: (b_, s_, 0)),
        compiler_params=_mosaic((_PAR, _PAR), blk),
        cost_estimate=cost,
    )(ctx, wo, bo, residual, gamma, beta)


def ffn_residual_ln(x, w1, b1, w2, b2, gamma, beta, *, eps=1e-5):
    B, S, H = x.shape
    pf = w1.shape[1]
    ts = _pick_tile(S, _SEQ_TILE)
    tp = _pick_tile(pf, 512, mult=128)
    blk = (2 * _nbytes((1, ts, H), jnp.bfloat16) + _nbytes((H, tp), w1.dtype)
           + _nbytes((1, tp), b1.dtype) + _nbytes((tp, H), w2.dtype)
           + 3 * _nbytes((1, H), jnp.float32))
    scratch = _nbytes((ts, H), jnp.float32)
    cost = pl.CostEstimate(flops=4 * B * S * H * pf + 10 * B * S * H,
                           transcendentals=B * S,
                           bytes_accessed=2 * B * S * H * 2 + 2 * H * pf * 2)
    return pl.pallas_call(
        functools.partial(_ffn_residual_ln_kernel, eps=eps),
        out_shape=jax.ShapeDtypeStruct((B, S, H), jnp.bfloat16),
        grid=(B, S // ts, pf // tp),
        in_specs=[
            pl.BlockSpec((1, ts, H), lambda b_, s_, p_: (b_, s_, 0)),
            pl.BlockSpec((H, tp), lambda b_, s_, p_: (0, p_)),
            pl.BlockSpec((1, tp), lambda b_, s_, p_: (0, p_)),
            pl.BlockSpec((tp, H), lambda b_, s_, p_: (p_, 0)),
            pl.BlockSpec((1, H), lambda b_, s_, p_: (0, 0)),
            pl.BlockSpec((1, H), lambda b_, s_, p_: (0, 0)),
            pl.BlockSpec((1, H), lambda b_, s_, p_: (0, 0)),
        ],
        out_specs=pl.BlockSpec((1, ts, H), lambda b_, s_, p_: (b_, s_, 0)),
        scratch_shapes=[pltpu.VMEM((ts, H), jnp.float32)],
        compiler_params=_mosaic((_PAR, _PAR, _ARB), blk, scratch),
        cost_estimate=cost,
    )(x, w1, b1, w2, b2, gamma, beta)


# ---------------------------------------------------------------------------
# Parameter init (deterministic, synthetic) -- fused layouts
# ---------------------------------------------------------------------------
def init_params(key, input_dim, hid_dim, n_layers, n_heads, pf_dim,
                max_length=200):
    def dense(k, fi, fo):
        return jax.random.normal(k, (fi, fo), jnp.float32) * 0.02

    keys = jax.random.split(key, 2 + n_layers)
    params = {
        "pos_emb": jax.random.normal(keys[0], (max_length, input_dim),
                                     jnp.float32) * 0.02,
        "w_lin": dense(keys[1], input_dim, hid_dim).astype(jnp.bfloat16),
        "b_lin": jnp.zeros((1, hid_dim), jnp.float32),
        "layers": [],
    }
    for li in range(n_layers):
        lk = jax.random.split(keys[2 + li], 6)
        wq = dense(lk[0], hid_dim, hid_dim)
        wk = dense(lk[1], hid_dim, hid_dim)
        wv = dense(lk[2], hid_dim, hid_dim)
        params["layers"].append({
            # fused QKV weight, (H, 3H): columns [Q | K | V], heads contiguous.
            "wqkv": jnp.concatenate([wq, wk, wv], axis=1).astype(jnp.bfloat16),
            "bqkv": jnp.zeros((1, 3 * hid_dim), jnp.float32),
            "wo": dense(lk[3], hid_dim, hid_dim).astype(jnp.bfloat16),
            "bo": jnp.zeros((1, hid_dim), jnp.float32),
            "ln1_g": jnp.ones((1, hid_dim), jnp.float32),
            "ln1_b": jnp.zeros((1, hid_dim), jnp.float32),
            "w1": dense(lk[4], hid_dim, pf_dim).astype(jnp.bfloat16),
            "b1": jnp.zeros((1, pf_dim), jnp.float32),
            "w2": dense(lk[5], pf_dim, hid_dim).astype(jnp.bfloat16),
            "b2": jnp.zeros((1, hid_dim), jnp.float32),
            "ln2_g": jnp.ones((1, hid_dim), jnp.float32),
            "ln2_b": jnp.zeros((1, hid_dim), jnp.float32),
        })
    return params


# ---------------------------------------------------------------------------
# Encoder forward (glue in JAX, hot paths in Pallas)
# ---------------------------------------------------------------------------
def encoder_forward(params, src, src_mask, n_heads):
    # src: (B, S, D_in) f32; src_mask: (B, 1, 1, S) -- 1 keep, 0 mask.
    B, S, _ = src.shape
    H = params["w_lin"].shape[1]

    # positional embedding lookup of arange(S) == a row slice of the table.
    pos = params["pos_emb"][:S]                                   # (S, D_in)
    # TODO(synk): nn.Dropout omitted (eval-mode identity; no training-mode RNG).
    x = embed_linear(src, pos, params["w_lin"], params["b_lin"],
                     scale=math.sqrt(H))                          # (B,S,H) bf16

    mask = src_mask.reshape(B, 1, S).astype(jnp.float32)          # key mask only

    n_layers = len(params["layers"])
    attn = None
    for li, lp in enumerate(params["layers"]):
        qkv = qkv_projection(x, lp["wqkv"], lp["bqkv"])           # (B,3,S,H)
        if li == n_layers - 1:
            ctx, attn = attention(qkv, mask, n_heads, with_attn=True)
        else:
            ctx = attention(qkv, mask, n_heads, with_attn=False)
        x = proj_residual_ln(ctx, lp["wo"], lp["bo"], x,
                             lp["ln1_g"], lp["ln1_b"])
        x = ffn_residual_ln(x, lp["w1"], lp["b1"], lp["w2"], lp["b2"],
                            lp["ln2_g"], lp["ln2_b"])

    return x.astype(jnp.float32), attn


# ---------------------------------------------------------------------------
if __name__ == "__main__":
    B, S, D_in = 2, 8, 16
    hid_dim, n_layers, n_heads, pf_dim = 32, 2, 4, 64

    key = jax.random.PRNGKey(0)
    k_param, k_src = jax.random.split(key)
    params = init_params(k_param, D_in, hid_dim, n_layers, n_heads, pf_dim)

    src = jax.random.normal(k_src, (B, S, D_in), jnp.float32)
    src_mask = jnp.ones((B, 1, 1, S), jnp.float32)
    src_mask = src_mask.at[1, 0, 0, 6:].set(0.0)   # mask tail of 2nd sequence

    fwd = jax.jit(functools.partial(encoder_forward, n_heads=n_heads))
    out, attention_w = fwd(params, src, src_mask)
    out = jax.block_until_ready(out)
    attention_w = jax.block_until_ready(attention_w)

    assert out.shape == (B, S, hid_dim)
    assert attention_w.shape == (B, n_heads, S, S)
    assert bool(jnp.all(jnp.isfinite(out)))
    assert bool(jnp.all(jnp.isfinite(attention_w)))
    # masked keys receive (numerically) zero attention weight
    assert float(jnp.max(attention_w[1, :, :, 6:])) < 1e-6
    print("KERNEL_OK")
</pallas_src>

<mosaic_0001>
module attributes {stable_mosaic.version = 11 : i64} {
  func.func @_embed_kernel(%arg0: i32, %arg1: i32, %arg2: memref<1x8x16xf32, #tpu.memory_space<vmem>>, %arg3: memref<8x16xf32, #tpu.memory_space<vmem>>, %arg4: memref<16x32xbf16, #tpu.memory_space<vmem>>, %arg5: memref<1x32xf32, #tpu.memory_space<vmem>>, %arg6: memref<1x8x32xbf16, #tpu.memory_space<vmem>>) attributes {dimension_semantics = [#tpu.dimension_semantics<parallel>, #tpu.dimension_semantics<parallel>], iteration_bounds = array<i64: 2, 1>, scalar_prefetch = 0 : i64, scratch_operands = 0 : i64, tpu.core_type = #tpu.core_type<tc>, window_params = [{transform_indices = @transform_0, window_bounds = array<i64: 1, 8, 16>}, {transform_indices = @transform_1, window_bounds = array<i64: 8, 16>}, {pipeline_mode = #tpu.pipeline_mode<synchronous>, transform_indices = @transform_2, window_bounds = array<i64: 16, 32>}, {pipeline_mode = #tpu.pipeline_mode<synchronous>, transform_indices = @transform_3, window_bounds = array<i64: 1, 32>}, {transform_indices = @transform_4, window_bounds = array<i64: 1, 8, 32>}]} {
    %c0 = arith.constant 0 : index
    %c0_0 = arith.constant 0 : index
    %c0_1 = arith.constant 0 : index
    %0 = vector.load %arg2[%c0, %c0_0, %c0_1] : memref<1x8x16xf32, #tpu.memory_space<vmem>>, vector<1x8x16xf32>
    %1 = vector.shape_cast %0 : vector<1x8x16xf32> to vector<8x16xf32>
    %cst = arith.constant 5.65685415 : f32
    %2 = vector.broadcast %cst : f32 to vector<8x16xf32>
    %3 = arith.mulf %1, %2 : vector<8x16xf32>
    %c0_2 = arith.constant 0 : index
    %c0_3 = arith.constant 0 : index
    %4 = vector.load %arg3[%c0_2, %c0_3] : memref<8x16xf32, #tpu.memory_space<vmem>>, vector<8x16xf32>
    %5 = arith.addf %3, %4 : vector<8x16xf32>
    %6 = arith.truncf %5 : vector<8x16xf32> to vector<8x16xbf16>
    %c0_4 = arith.constant 0 : index
    %c0_5 = arith.constant 0 : index
    %7 = vector.load %arg4[%c0_4, %c0_5] : memref<16x32xbf16, #tpu.memory_space<vmem>>, vector<16x32xbf16>
    %cst_6 = arith.constant dense<0.000000e+00> : vector<8x32xf32>
    %8 = tpu.matmul %6, %7, %cst_6 {dimension_numbers = #tpu.dot_dimension_numbers<[1], [0], [0], [1], [0, 0, 1, 1], [], []>} : vector<8x16xbf16>, vector<16x32xbf16>, vector<8x32xf32> -> vector<8x32xf32>
    %c0_7 = arith.constant 0 : index
    %c0_8 = arith.constant 0 : index
    %9 = vector.load %arg5[%c0_7, %c0_8] : memref<1x32xf32, #tpu.memory_space<vmem>>, vector<1x32xf32>
    %10 = vector.broadcast %9 : vector<1x32xf32> to vector<8x32xf32>
    %11 = arith.addf %8, %10 : vector<8x32xf32>
    %12 = arith.truncf %11 : vector<8x32xf32> to vector<8x32xbf16>
    %c0_9 = arith.constant 0 : index
    %c0_10 = arith.constant 0 : index
    %c0_11 = arith.constant 0 : index
    %13 = vector.load %arg6[%c0_9, %c0_10, %c0_11] : memref<1x8x32xbf16, #tpu.memory_space<vmem>>, vector<1x8x32xbf16>
    %14 = vector.shape_cast %13 : vector<1x8x32xbf16> to vector<8x32xbf16>
    %15 = vector.shape_cast %12 : vector<8x32xbf16> to vector<1x8x32xbf16>
    tpu.vector_store %arg6[%c0_9, %c0_10, %c0_11], %15 {strides = array<i32>} : memref<1x8x32xbf16, #tpu.memory_space<vmem>>, vector<1x8x32xbf16>,
    return
  }
  func.func @transform_0(%arg0: i32, %arg1: i32) -> (i32, i32, i32) {
    %c0_i32 = arith.constant 0 : i32
    %c0_i32_0 = arith.constant 0 : i32
    return %arg0, %arg1, %c0_i32 : i32, i32, i32
  }
  func.func @transform_1(%arg0: i32, %arg1: i32) -> (i32, i32) {
    %c0_i32 = arith.constant 0 : i32
    %c0_i32_0 = arith.constant 0 : i32
    return %arg1, %c0_i32 : i32, i32
  }
  func.func @transform_2(%arg0: i32, %arg1: i32) -> (i32, i32) {
    %c0_i32 = arith.constant 0 : i32
    %c0_i32_0 = arith.constant 0 : i32
    %c0_i32_1 = arith.constant 0 : i32
    return %c0_i32, %c0_i32_0 : i32, i32
  }
  func.func @transform_3(%arg0: i32, %arg1: i32) -> (i32, i32) {
    %c0_i32 = arith.constant 0 : i32
    %c0_i32_0 = arith.constant 0 : i32
    %c0_i32_1 = arith.constant 0 : i32
    return %c0_i32, %c0_i32_0 : i32, i32
  }
  func.func @transform_4(%arg0: i32, %arg1: i32) -> (i32, i32, i32) {
    %c0_i32 = arith.constant 0 : i32
    %c0_i32_0 = arith.constant 0 : i32
    return %arg0, %arg1, %c0_i32 : i32, i32, i32
  }
}

module attributes {stable_mosaic.version = 11 : i64} {
  func.func @_qkv_kernel(%arg0: i32, %arg1: i32, %arg2: i32, %arg3: memref<1x8x32xbf16, #tpu.memory_space<vmem>>, %arg4: memref<32x96xbf16, #tpu.memory_space<vmem>>, %arg5: memref<1x96xf32, #tpu.memory_space<vmem>>, %arg6: memref<1x3x8x32xbf16, #tpu.memory_space<vmem>>, %arg7: memref<8x96xf32, #tpu.memory_space<vmem>>) attributes {dimension_semantics = [#tpu.dimension_semantics<parallel>, #tpu.dimension_semantics<parallel>, #tpu.dimension_semantics<arbitrary>], iteration_bounds = array<i64: 2, 1, 1>, scalar_prefetch = 0 : i64, scratch_operands = 1 : i64, tpu.core_type = #tpu.core_type<tc>, window_params = [{transform_indices = @transform_0, window_bounds = array<i64: 1, 8, 32>}, {transform_indices = @transform_1, window_bounds = array<i64: 32, 96>}, {pipeline_mode = #tpu.pipeline_mode<synchronous>, transform_indices = @transform_2, window_bounds = array<i64: 1, 96>}, {transform_indices = @transform_3, window_bounds = array<i64: 1, 3, 8, 32>}]} {
    %c0_i32 = arith.constant 0 : i32
    %0 = arith.cmpi eq, %arg2, %c0_i32 : i32
    %1 = arith.extui %0 : i1 to i32
    %c0_i32_0 = arith.constant 0 : i32
    %2 = arith.cmpi ne, %1, %c0_i32_0 : i32
    scf.if %2 {
      %cst_11 = arith.constant 0.000000e+00 : f32
      %13 = vector.broadcast %cst_11 : f32 to vector<8x96xf32>
      %c0_12 = arith.constant 0 : index
      %c0_13 = arith.constant 0 : index
      %14 = vector.load %arg7[%c0_12, %c0_13] : memref<8x96xf32, #tpu.memory_space<vmem>>, vector<8x96xf32>
      tpu.vector_store %arg7[%c0_12, %c0_13], %13 {strides = array<i32>} : memref<8x96xf32, #tpu.memory_space<vmem>>, vector<8x96xf32>,
    } else {
    }
    %c0 = arith.constant 0 : index
    %c0_1 = arith.constant 0 : index
    %3 = vector.load %arg7[%c0, %c0_1] : memref<8x96xf32, #tpu.memory_space<vmem>>, vector<8x96xf32>
    %c0_2 = arith.constant 0 : index
    %c0_3 = arith.constant 0 : index
    %c0_4 = arith.constant 0 : index
    %4 = vector.load %arg3[%c0_2, %c0_3, %c0_4] : memref<1x8x32xbf16, #tpu.memory_space<vmem>>, vector<1x8x32xbf16>
    %5 = vector.shape_cast %4 : vector<1x8x32xbf16> to vector<8x32xbf16>
    %c0_5 = arith.constant 0 : index
    %c0_6 = arith.constant 0 : index
    %6 = vector.load %arg4[%c0_5, %c0_6] : memref<32x96xbf16, #tpu.memory_space<vmem>>, vector<32x96xbf16>
    %cst = arith.constant dense<0.000000e+00> : vector<8x96xf32>
    %7 = tpu.matmul %5, %6, %cst {dimension_numbers = #tpu.dot_dimension_numbers<[1], [0], [0], [1], [0, 0, 1, 1], [], []>} : vector<8x32xbf16>, vector<32x96xbf16>, vector<8x96xf32> -> vector<8x96xf32>
    %8 = arith.addf %3, %7 : vector<8x96xf32>
    %c0_7 = arith.constant 0 : index
    %c0_8 = arith.constant 0 : index
    %9 = vector.load %arg7[%c0_7, %c0_8] : memref<8x96xf32, #tpu.memory_space<vmem>>, vector<8x96xf32>
    tpu.vector_store %arg7[%c0_7, %c0_8], %8 {strides = array<i32>} : memref<8x96xf32, #tpu.memory_space<vmem>>, vector<8x96xf32>,
    %c0_i32_9 = arith.constant 0 : i32
    %10 = arith.cmpi eq, %arg2, %c0_i32_9 : i32
    %11 = arith.extui %10 : i1 to i32
    %c0_i32_10 = arith.constant 0 : i32
    %12 = arith.cmpi ne, %11, %c0_i32_10 : i32
    scf.if %12 {
      %c0_11 = arith.constant 0 : index
      %c0_12 = arith.constant 0 : index
      %13 = vector.load %arg7[%c0_11, %c0_12] : memref<8x96xf32, #tpu.memory_space<vmem>>, vector<8x96xf32>
      %c0_13 = arith.constant 0 : index
      %c0_14 = arith.constant 0 : index
      %14 = vector.load %arg5[%c0_13, %c0_14] : memref<1x96xf32, #tpu.memory_space<vmem>>, vector<1x96xf32>
      %15 = vector.broadcast %14 : vector<1x96xf32> to vector<8x96xf32>
      %16 = arith.addf %13, %15 : vector<8x96xf32>
      %17 = vector.extract_strided_slice %16 {offsets = [0, 0], sizes = [8, 32], strides = [1, 1]} : vector<8x96xf32> to vector<8x32xf32>
      %18 = arith.truncf %17 : vector<8x32xf32> to vector<8x32xbf16>
      %c0_15 = arith.constant 0 : index
      %c0_16 = arith.constant 0 : index
      %c0_17 = arith.constant 0 : index
      %c0_18 = arith.constant 0 : index
      %19 = vector.load %arg6[%c0_15, %c0_16, %c0_17, %c0_18] : memref<1x3x8x32xbf16, #tpu.memory_space<vmem>>, vector<1x1x8x32xbf16>
      %20 = vector.shape_cast %19 : vector<1x1x8x32xbf16> to vector<8x32xbf16>
      %21 = vector.shape_cast %18 : vector<8x32xbf16> to vector<1x1x8x32xbf16>
      tpu.vector_store %arg6[%c0_15, %c0_16, %c0_17, %c0_18], %21 {strides = array<i32>} : memref<1x3x8x32xbf16, #tpu.memory_space<vmem>>, vector<1x1x8x32xbf16>,
      %22 = vector.extract_strided_slice %16 {offsets = [0, 32], sizes = [8, 32], strides = [1, 1]} : vector<8x96xf32> to vector<8x32xf32>
      %23 = arith.truncf %22 : vector<8x32xf32> to vector<8x32xbf16>
      %c0_19 = arith.constant 0 : index
      %c1 = arith.constant 1 : index
      %c0_20 = arith.constant 0 : index
      %c0_21 = arith.constant 0 : index
      %24 = vector.load %arg6[%c0_19, %c1, %c0_20, %c0_21] : memref<1x3x8x32xbf16, #tpu.memory_space<vmem>>, vector<1x1x8x32xbf16>
      %25 = vector.shape_cast %24 : vector<1x1x8x32xbf16> to vector<8x32xbf16>
      %26 = vector.shape_cast %23 : vector<8x32xbf16> to vector<1x1x8x32xbf16>
      tpu.vector_store %arg6[%c0_19, %c1, %c0_20, %c0_21], %26 {strides = array<i32>} : memref<1x3x8x32xbf16, #tpu.memory_space<vmem>>, vector<1x1x8x32xbf16>,
      %27 = vector.extract_strided_slice %16 {offsets = [0, 64], sizes = [8, 32], strides = [1, 1]} : vector<8x96xf32> to vector<8x32xf32>
      %28 = arith.truncf %27 : vector<8x32xf32> to vector<8x32xbf16>
      %c0_22 = arith.constant 0 : index
      %c2 = arith.constant 2 : index
      %c0_23 = arith.constant 0 : index
      %c0_24 = arith.constant 0 : index
      %29 = vector.load %arg6[%c0_22, %c2, %c0_23, %c0_24] : memref<1x3x8x32xbf16, #tpu.memory_space<vmem>>, vector<1x1x8x32xbf16>
      %30 = vector.shape_cast %29 : vector<1x1x8x32xbf16> to vector<8x32xbf16>
      %31 = vector.shape_cast %28 : vector<8x32xbf16> to vector<1x1x8x32xbf16>
      tpu.vector_store %arg6[%c0_22, %c2, %c0_23, %c0_24], %31 {strides = array<i32>} : memref<1x3x8x32xbf16, #tpu.memory_space<vmem>>, vector<1x1x8x32xbf16>,
    } else {
    }
    return
  }
  func.func @transform_0(%arg0: i32, %arg1: i32, %arg2: i32) -> (i32, i32, i32) {
    %c0_i32 = arith.constant 0 : i32
    return %arg0, %arg1, %arg2 : i32, i32, i32
  }
  func.func @transform_1(%arg0: i32, %arg1: i32, %arg2: i32) -> (i32, i32) {
    %c0_i32 = arith.constant 0 : i32
    %c0_i32_0 = arith.constant 0 : i32
    return %arg2, %c0_i32 : i32, i32
  }
  func.func @transform_2(%arg0: i32, %arg1: i32, %arg2: i32) -> (i32, i32) {
    %c0_i32 = arith.constant 0 : i32
    %c0_i32_0 = arith.constant 0 : i32
    %c0_i32_1 = arith.constant 0 : i32
    return %c0_i32, %c0_i32_0 : i32, i32
  }
  func.func @transform_3(%arg0: i32, %arg1: i32, %arg2: i32) -> (i32, i32, i32, i32) {
    %c0_i32 = arith.constant 0 : i32
    %c0_i32_0 = arith.constant 0 : i32
    %c0_i32_1 = arith.constant 0 : i32
    return %arg0, %c0_i32, %arg1, %c0_i32_0 : i32, i32, i32, i32
  }
}

module attributes {stable_mosaic.version = 11 : i64} {
  func.func @_attn_kernel(%arg0: i32, %arg1: i32, %arg2: memref<1x1x8x32xbf16, #tpu.memory_space<vmem>>, %arg3: memref<1x1x8x32xbf16, #tpu.memory_space<vmem>>, %arg4: memref<1x1x8x32xbf16, #tpu.memory_space<vmem>>, %arg5: memref<1x1x8xf32, #tpu.memory_space<vmem>>, %arg6: memref<1x8x32xbf16, #tpu.memory_space<vmem>>) attributes {dimension_semantics = [#tpu.dimension_semantics<parallel>, #tpu.dimension_semantics<parallel>], iteration_bounds = array<i64: 2, 1>, scalar_prefetch = 0 : i64, scratch_operands = 0 : i64, tpu.core_type = #tpu.core_type<tc>, window_params = [{transform_indices = @transform_0, window_bounds = array<i64: 1, 1, 8, 32>}, {transform_indices = @transform_1, window_bounds = array<i64: 1, 1, 8, 32>}, {transform_indices = @transform_2, window_bounds = array<i64: 1, 1, 8, 32>}, {transform_indices = @transform_3, window_bounds = array<i64: 1, 1, 8>}, {transform_indices = @transform_4, window_bounds = array<i64: 1, 8, 32>}]} {
    %c0 = arith.constant 0 : index
    %c0_0 = arith.constant 0 : index
    %c0_1 = arith.constant 0 : index
    %c0_2 = arith.constant 0 : index
    %0 = vector.load %arg2[%c0, %c0_0, %c0_1, %c0_2] : memref<1x1x8x32xbf16, #tpu.memory_space<vmem>>, vector<1x1x8x32xbf16>
    %1 = vector.shape_cast %0 : vector<1x1x8x32xbf16> to vector<8x32xbf16>
    %c0_3 = arith.constant 0 : index
    %c0_4 = arith.constant 0 : index
    %c0_5 = arith.constant 0 : index
    %c0_6 = arith.constant 0 : index
    %2 = vector.load %arg3[%c0_3, %c0_4, %c0_5, %c0_6] : memref<1x1x8x32xbf16, #tpu.memory_space<vmem>>, vector<1x1x8x32xbf16>
    %3 = vector.shape_cast %2 : vector<1x1x8x32xbf16> to vector<8x32xbf16>
    %c0_7 = arith.constant 0 : index
    %c0_8 = arith.constant 0 : index
    %c0_9 = arith.constant 0 : index
    %c0_10 = arith.constant 0 : index
    %4 = vector.load %arg4[%c0_7, %c0_8, %c0_9, %c0_10] : memref<1x1x8x32xbf16, #tpu.memory_space<vmem>>, vector<1x1x8x32xbf16>
    %5 = vector.shape_cast %4 : vector<1x1x8x32xbf16> to vector<8x32xbf16>
    %c0_11 = arith.constant 0 : index
    %c0_12 = arith.constant 0 : index
    %c0_13 = arith.constant 0 : index
    %6 = vector.load %arg5[%c0_11, %c0_12, %c0_13] : memref<1x1x8xf32, #tpu.memory_space<vmem>>, vector<1x1x8xf32>
    %7 = vector.shape_cast %6 : vector<1x1x8xf32> to vector<1x8xf32>
    %8 = vector.extract_strided_slice %1 {offsets = [0, 0], sizes = [8, 8], strides = [1, 1]} : vector<8x32xbf16> to vector<8x8xbf16>
    %cst = arith.constant 3.535160e-01 : bf16
    %9 = vector.broadcast %cst : bf16 to vector<8x8xbf16>
    %10 = arith.mulf %8, %9 : vector<8x8xbf16>
    %11 = vector.extract_strided_slice %3 {offsets = [0, 0], sizes = [8, 8], strides = [1, 1]} : vector<8x32xbf16> to vector<8x8xbf16>
    %cst_14 = arith.constant dense<0.000000e+00> : vector<8x8xf32>
    %12 = tpu.matmul %10, %11, %cst_14 {dimension_numbers = #tpu.dot_dimension_numbers<[1], [1], [0], [0], [0, 0, 1, 0], [], []>} : vector<8x8xbf16>, vector<8x8xbf16>, vector<8x8xf32> -> vector<8x8xf32>
    %cst_15 = arith.constant 0.000000e+00 : f32
    %13 = vector.broadcast %cst_15 : f32 to vector<1x8xf32>
    %14 = arith.cmpf ogt, %7, %13 : vector<1x8xf32>
    %cst_16 = arith.constant -1.000000e+10 : f32
    %15 = vector.shape_cast %14 : vector<1x8xi1> to vector<1x8xi1>
    %16 = vector.broadcast %15 : vector<1x8xi1> to vector<8x8xi1>
    %17 = vector.broadcast %cst_16 : f32 to vector<8x8xf32>
    %18 = arith.select %16, %12, %17 : vector<8x8xi1>, vector<8x8xf32>
    %cst_17 = arith.constant dense<0xFF800000> : vector<8xf32>
    %19 = vector.multi_reduction <maximumf>, %18, %cst_17 [1] : vector<8x8xf32> to vector<8xf32>
    %20 = vector.shape_cast %19 : vector<8xf32> to vector<8x1xf32>
    %21 = vector.broadcast %20 : vector<8x1xf32> to vector<8x8xf32>
    %22 = arith.subf %18, %21 : vector<8x8xf32>
    %23 = math.exp %22 : vector<8x8xf32>
    %cst_18 = arith.constant dense<0.000000e+00> : vector<8xf32>
    %24 = vector.multi_reduction <add>, %23, %cst_18 [1] : vector<8x8xf32> to vector<8xf32>
    %25 = vector.shape_cast %24 : vector<8xf32> to vector<8x1xf32>
    %26 = tpu.reciprocal %25 {approx = true} : vector<8x1xf32> -> vector<8x1xf32>
    %27 = vector.broadcast %26 : vector<8x1xf32> to vector<8x8xf32>
    %28 = arith.mulf %23, %27 : vector<8x8xf32>
    %29 = arith.truncf %28 : vector<8x8xf32> to vector<8x8xbf16>
    %30 = vector.extract_strided_slice %5 {offsets = [0, 0], sizes = [8, 8], strides = [1, 1]} : vector<8x32xbf16> to vector<8x8xbf16>
    %cst_19 = arith.constant dense<0.000000e+00> : vector<8x8xf32>
    %31 = tpu.matmul %29, %30, %cst_19 {dimension_numbers = #tpu.dot_dimension_numbers<[1], [0], [0], [1], [0, 0, 1, 1], [], []>} : vector<8x8xbf16>, vector<8x8xbf16>, vector<8x8xf32> -> vector<8x8xf32>
    %32 = vector.extract_strided_slice %1 {offsets = [0, 8], sizes = [8, 8], strides = [1, 1]} : vector<8x32xbf16> to vector<8x8xbf16>
    %cst_20 = arith.constant 3.535160e-01 : bf16
    %33 = vector.broadcast %cst_20 : bf16 to vector<8x8xbf16>
    %34 = arith.mulf %32, %33 : vector<8x8xbf16>
    %35 = vector.extract_strided_slice %3 {offsets = [0, 8], sizes = [8, 8], strides = [1, 1]} : vector<8x32xbf16> to vector<8x8xbf16>
    %cst_21 = arith.constant dense<0.000000e+00> : vector<8x8xf32>
    %36 = tpu.matmul %34, %35, %cst_21 {dimension_numbers = #tpu.dot_dimension_numbers<[1], [1], [0], [0], [0, 0, 1, 0], [], []>} : vector<8x8xbf16>, vector<8x8xbf16>, vector<8x8xf32> -> vector<8x8xf32>
    %cst_22 = arith.constant 0.000000e+00 : f32
    %37 = vector.broadcast %cst_22 : f32 to vector<1x8xf32>
    %38 = arith.cmpf ogt, %7, %37 : vector<1x8xf32>
    %cst_23 = arith.constant -1.000000e+10 : f32
    %39 = vector.shape_cast %38 : vector<1x8xi1> to vector<1x8xi1>
    %40 = vector.broadcast %39 : vector<1x8xi1> to vector<8x8xi1>
    %41 = vector.broadcast %cst_23 : f32 to vector<8x8xf32>
    %42 = arith.select %40, %36, %41 : vector<8x8xi1>, vector<8x8xf32>
    %cst_24 = arith.constant dense<0xFF800000> : vector<8xf32>
    %43 = vector.multi_reduction <maximumf>, %42, %cst_24 [1] : vector<8x8xf32> to vector<8xf32>
    %44 = vector.shape_cast %43 : vector<8xf32> to vector<8x1xf32>
    %45 = vector.broadcast %44 : vector<8x1xf32> to vector<8x8xf32>
    %46 = arith.subf %42, %45 : vector<8x8xf32>
    %47 = math.exp %46 : vector<8x8xf32>
    %cst_25 = arith.constant dense<0.000000e+00> : vector<8xf32>
    %48 = vector.multi_reduction <add>, %47, %cst_25 [1] : vector<8x8xf32> to vector<8xf32>
    %49 = vector.shape_cast %48 : vector<8xf32> to vector<8x1xf32>
    %50 = tpu.reciprocal %49 {approx = true} : vector<8x1xf32> -> vector<8x1xf32>
    %51 = vector.broadcast %50 : vector<8x1xf32> to vector<8x8xf32>
    %52 = arith.mulf %47, %51 : vector<8x8xf32>
    %53 = arith.truncf %52 : vector<8x8xf32> to vector<8x8xbf16>
    %54 = vector.extract_strided_slice %5 {offsets = [0, 8], sizes = [8, 8], strides = [1, 1]} : vector<8x32xbf16> to vector<8x8xbf16>
    %cst_26 = arith.constant dense<0.000000e+00> : vector<8x8xf32>
    %55 = tpu.matmul %53, %54, %cst_26 {dimension_numbers = #tpu.dot_dimension_numbers<[1], [0], [0], [1], [0, 0, 1, 1], [], []>} : vector<8x8xbf16>, vector<8x8xbf16>, vector<8x8xf32> -> vector<8x8xf32>
    %56 = vector.extract_strided_slice %1 {offsets = [0, 16], sizes = [8, 8], strides = [1, 1]} : vector<8x32xbf16> to vector<8x8xbf16>
    %cst_27 = arith.constant 3.535160e-01 : bf16
    %57 = vector.broadcast %cst_27 : bf16 to vector<8x8xbf16>
    %58 = arith.mulf %56, %57 : vector<8x8xbf16>
    %59 = vector.extract_strided_slice %3 {offsets = [0, 16], sizes = [8, 8], strides = [1, 1]} : vector<8x32xbf16> to vector<8x8xbf16>
    %cst_28 = arith.constant dense<0.000000e+00> : vector<8x8xf32>
    %60 = tpu.matmul %58, %59, %cst_28 {dimension_numbers = #tpu.dot_dimension_numbers<[1], [1], [0], [0], [0, 0, 1, 0], [], []>} : vector<8x8xbf16>, vector<8x8xbf16>, vector<8x8xf32> -> vector<8x8xf32>
    %cst_29 = arith.constant 0.000000e+00 : f32
    %61 = vector.broadcast %cst_29 : f32 to vector<1x8xf32>
    %62 = arith.cmpf ogt, %7, %61 : vector<1x8xf32>
    %cst_30 = arith.constant -1.000000e+10 : f32
    %63 = vector.shape_cast %62 : vector<1x8xi1> to vector<1x8xi1>
    %64 = vector.broadcast %63 : vector<1x8xi1> to vector<8x8xi1>
    %65 = vector.broadcast %cst_30 : f32 to vector<8x8xf32>
    %66 = arith.select %64, %60, %65 : vector<8x8xi1>, vector<8x8xf32>
    %cst_31 = arith.constant dense<0xFF800000> : vector<8xf32>
    %67 = vector.multi_reduction <maximumf>, %66, %cst_31 [1] : vector<8x8xf32> to vector<8xf32>
    %68 = vector.shape_cast %67 : vector<8xf32> to vector<8x1xf32>
    %69 = vector.broadcast %68 : vector<8x1xf32> to vector<8x8xf32>
    %70 = arith.subf %66, %69 : vector<8x8xf32>
    %71 = math.exp %70 : vector<8x8xf32>
    %cst_32 = arith.constant dense<0.000000e+00> : vector<8xf32>
    %72 = vector.multi_reduction <add>, %71, %cst_32 [1] : vector<8x8xf32> to vector<8xf32>
    %73 = vector.shape_cast %72 : vector<8xf32> to vector<8x1xf32>
    %74 = tpu.reciprocal %73 {approx = true} : vector<8x1xf32> -> vector<8x1xf32>
    %75 = vector.broadcast %74 : vector<8x1xf32> to vector<8x8xf32>
    %76 = arith.mulf %71, %75 : vector<8x8xf32>
    %77 = arith.truncf %76 : vector<8x8xf32> to vector<8x8xbf16>
    %78 = vector.extract_strided_slice %5 {offsets = [0, 16], sizes = [8, 8], strides = [1, 1]} : vector<8x32xbf16> to vector<8x8xbf16>
    %cst_33 = arith.constant dense<0.000000e+00> : vector<8x8xf32>
    %79 = tpu.matmul %77, %78, %cst_33 {dimension_numbers = #tpu.dot_dimension_numbers<[1], [0], [0], [1], [0, 0, 1, 1], [], []>} : vector<8x8xbf16>, vector<8x8xbf16>, vector<8x8xf32> -> vector<8x8xf32>
    %80 = vector.extract_strided_slice %1 {offsets = [0, 24], sizes = [8, 8], strides = [1, 1]} : vector<8x32xbf16> to vector<8x8xbf16>
    %cst_34 = arith.constant 3.535160e-01 : bf16
    %81 = vector.broadcast %cst_34 : bf16 to vector<8x8xbf16>
    %82 = arith.mulf %80, %81 : vector<8x8xbf16>
    %83 = vector.extract_strided_slice %3 {offsets = [0, 24], sizes = [8, 8], strides = [1, 1]} : vector<8x32xbf16> to vector<8x8xbf16>
    %cst_35 = arith.constant dense<0.000000e+00> : vector<8x8xf32>
    %84 = tpu.matmul %82, %83, %cst_35 {dimension_numbers = #tpu.dot_dimension_numbers<[1], [1], [0], [0], [0, 0, 1, 0], [], []>} : vector<8x8xbf16>, vector<8x8xbf16>, vector<8x8xf32> -> vector<8x8xf32>
    %cst_36 = arith.constant 0.000000e+00 : f32
    %85 = vector.broadcast %cst_36 : f32 to vector<1x8xf32>
    %86 = arith.cmpf ogt, %7, %85 : vector<1x8xf32>
    %cst_37 = arith.constant -1.000000e+10 : f32
    %87 = vector.shape_cast %86 : vector<1x8xi1> to vector<1x8xi1>
    %88 = vector.broadcast %87 : vector<1x8xi1> to vector<8x8xi1>
    %89 = vector.broadcast %cst_37 : f32 to vector<8x8xf32>
    %90 = arith.select %88, %84, %89 : vector<8x8xi1>, vector<8x8xf32>
    %cst_38 = arith.constant dense<0xFF800000> : vector<8xf32>
    %91 = vector.multi_reduction <maximumf>, %90, %cst_38 [1] : vector<8x8xf32> to vector<8xf32>
    %92 = vector.shape_cast %91 : vector<8xf32> to vector<8x1xf32>
    %93 = vector.broadcast %92 : vector<8x1xf32> to vector<8x8xf32>
    %94 = arith.subf %90, %93 : vector<8x8xf32>
    %95 = math.exp %94 : vector<8x8xf32>
    %cst_39 = arith.constant dense<0.000000e+00> : vector<8xf32>
    %96 = vector.multi_reduction <add>, %95, %cst_39 [1] : vector<8x8xf32> to vector<8xf32>
    %97 = vector.shape_cast %96 : vector<8xf32> to vector<8x1xf32>
    %98 = tpu.reciprocal %97 {approx = true} : vector<8x1xf32> -> vector<8x1xf32>
    %99 = vector.broadcast %98 : vector<8x1xf32> to vector<8x8xf32>
    %100 = arith.mulf %95, %99 : vector<8x8xf32>
    %101 = arith.truncf %100 : vector<8x8xf32> to vector<8x8xbf16>
    %102 = vector.extract_strided_slice %5 {offsets = [0, 24], sizes = [8, 8], strides = [1, 1]} : vector<8x32xbf16> to vector<8x8xbf16>
    %cst_40 = arith.constant dense<0.000000e+00> : vector<8x8xf32>
    %103 = tpu.matmul %101, %102, %cst_40 {dimension_numbers = #tpu.dot_dimension_numbers<[1], [0], [0], [1], [0, 0, 1, 1], [], []>} : vector<8x8xbf16>, vector<8x8xbf16>, vector<8x8xf32> -> vector<8x8xf32>
    %104 = tpu.concatenate %31, %55, %79, %103 in 1 : vector<8x8xf32>, vector<8x8xf32>, vector<8x8xf32>, vector<8x8xf32> -> vector<8x32xf32>
    %105 = arith.truncf %104 : vector<8x32xf32> to vector<8x32xbf16>
    %c0_41 = arith.constant 0 : index
    %c0_42 = arith.constant 0 : index
    %c0_43 = arith.constant 0 : index
    %106 = vector.load %arg6[%c0_41, %c0_42, %c0_43] : memref<1x8x32xbf16, #tpu.memory_space<vmem>>, vector<1x8x32xbf16>
    %107 = vector.shape_cast %106 : vector<1x8x32xbf16> to vector<8x32xbf16>
    %108 = vector.shape_cast %105 : vector<8x32xbf16> to vector<1x8x32xbf16>
    tpu.vector_store %arg6[%c0_41, %c0_42, %c0_43], %108 {strides = array<i32>} : memref<1x8x32xbf16, #tpu.memory_space<vmem>>, vector<1x8x32xbf16>,
    return
  }
  func.func @transform_0(%arg0: i32, %arg1: i32) -> (i32, i32, i32, i32) {
    %c0_i32 = arith.constant 0 : i32
    %c0_i32_0 = arith.constant 0 : i32
    %c0_i32_1 = arith.constant 0 : i32
    return %arg0, %c0_i32, %arg1, %c0_i32_0 : i32, i32, i32, i32
  }
  func.func @transform_1(%arg0: i32, %arg1: i32) -> (i32, i32, i32, i32) {
    %c1_i32 = arith.constant 1 : i32
    %c0_i32 = arith.constant 0 : i32
    %c0_i32_0 = arith.constant 0 : i32
    %c0_i32_1 = arith.constant 0 : i32
    return %arg0, %c1_i32, %c0_i32, %c0_i32_0 : i32, i32, i32, i32
  }
  func.func @transform_2(%arg0: i32, %arg1: i32) -> (i32, i32, i32, i32) {
    %c2_i32 = arith.constant 2 : i32
    %c0_i32 = arith.constant 0 : i32
    %c0_i32_0 = arith.constant 0 : i32
    %c0_i32_1 = arith.constant 0 : i32
    return %arg0, %c2_i32, %c0_i32, %c0_i32_0 : i32, i32, i32, i32
  }
  func.func @transform_3(%arg0: i32, %arg1: i32) -> (i32, i32, i32) {
    %c0_i32 = arith.constant 0 : i32
    %c0_i32_0 = arith.constant 0 : i32
    %c0_i32_1 = arith.constant 0 : i32
    return %arg0, %c0_i32, %c0_i32_0 : i32, i32, i32
  }
  func.func @transform_4(%arg0: i32, %arg1: i32) -> (i32, i32, i32) {
    %c0_i32 = arith.constant 0 : i32
    %c0_i32_0 = arith.constant 0 : i32
    return %arg0, %arg1, %c0_i32 : i32, i32, i32
  }
}

module attributes {stable_mosaic.version = 11 : i64} {
  func.func @_proj_residual_ln_kernel(%arg0: i32, %arg1: i32, %arg2: memref<1x8x32xbf16, #tpu.memory_space<vmem>>, %arg3: memref<32x32xbf16, #tpu.memory_space<vmem>>, %arg4: memref<1x32xf32, #tpu.memory_space<vmem>>, %arg5: memref<1x8x32xbf16, #tpu.memory_space<vmem>>, %arg6: memref<1x32xf32, #tpu.memory_space<vmem>>, %arg7: memref<1x32xf32, #tpu.memory_space<vmem>>, %arg8: memref<1x8x32xbf16, #tpu.memory_space<vmem>>) attributes {dimension_semantics = [#tpu.dimension_semantics<parallel>, #tpu.dimension_semantics<parallel>], iteration_bounds = array<i64: 2, 1>, scalar_prefetch = 0 : i64, scratch_operands = 0 : i64, tpu.core_type = #tpu.core_type<tc>, window_params = [{transform_indices = @transform_0, window_bounds = array<i64: 1, 8, 32>}, {pipeline_mode = #tpu.pipeline_mode<synchronous>, transform_indices = @transform_1, window_bounds = array<i64: 32, 32>}, {pipeline_mode = #tpu.pipeline_mode<synchronous>, transform_indices = @transform_2, window_bounds = array<i64: 1, 32>}, {transform_indices = @transform_3, window_bounds = array<i64: 1, 8, 32>}, {pipeline_mode = #tpu.pipeline_mode<synchronous>, transform_indices = @transform_4, window_bounds = array<i64: 1, 32>}, {pipeline_mode = #tpu.pipeline_mode<synchronous>, transform_indices = @transform_5, window_bounds = array<i64: 1, 32>}, {transform_indices = @transform_6, window_bounds = array<i64: 1, 8, 32>}]} {
    %c0 = arith.constant 0 : index
    %c0_0 = arith.constant 0 : index
    %c0_1 = arith.constant 0 : index
    %0 = vector.load %arg2[%c0, %c0_0, %c0_1] : memref<1x8x32xbf16, #tpu.memory_space<vmem>>, vector<1x8x32xbf16>
    %1 = vector.shape_cast %0 : vector<1x8x32xbf16> to vector<8x32xbf16>
    %c0_2 = arith.constant 0 : index
    %c0_3 = arith.constant 0 : index
    %2 = vector.load %arg3[%c0_2, %c0_3] : memref<32x32xbf16, #tpu.memory_space<vmem>>, vector<32x32xbf16>
    %cst = arith.constant dense<0.000000e+00> : vector<8x32xf32>
    %3 = tpu.matmul %1, %2, %cst {dimension_numbers = #tpu.dot_dimension_numbers<[1], [0], [0], [1], [0, 0, 1, 1], [], []>} : vector<8x32xbf16>, vector<32x32xbf16>, vector<8x32xf32> -> vector<8x32xf32>
    %c0_4 = arith.constant 0 : index
    %c0_5 = arith.constant 0 : index
    %4 = vector.load %arg4[%c0_4, %c0_5] : memref<1x32xf32, #tpu.memory_space<vmem>>, vector<1x32xf32>
    %5 = vector.broadcast %4 : vector<1x32xf32> to vector<8x32xf32>
    %6 = arith.addf %3, %5 : vector<8x32xf32>
    %c0_6 = arith.constant 0 : index
    %c0_7 = arith.constant 0 : index
    %c0_8 = arith.constant 0 : index
    %7 = vector.load %arg5[%c0_6, %c0_7, %c0_8] : memref<1x8x32xbf16, #tpu.memory_space<vmem>>, vector<1x8x32xbf16>
    %8 = vector.shape_cast %7 : vector<1x8x32xbf16> to vector<8x32xbf16>
    %9 = arith.extf %8 : vector<8x32xbf16> to vector<8x32xf32>
    %10 = arith.addf %6, %9 : vector<8x32xf32>
    %cst_9 = arith.constant dense<0.000000e+00> : vector<8xf32>
    %11 = vector.multi_reduction <add>, %10, %cst_9 [1] : vector<8x32xf32> to vector<8xf32>
    %12 = vector.shape_cast %11 : vector<8xf32> to vector<8x1xf32>
    %cst_10 = arith.constant 3.200000e+01 : f32
    %13 = vector.broadcast %cst_10 : f32 to vector<8x1xf32>
    %14 = arith.divf %12, %13 : vector<8x1xf32>
    %15 = vector.broadcast %14 : vector<8x1xf32> to vector<8x32xf32>
    %16 = arith.subf %10, %15 : vector<8x32xf32>
    %17 = arith.mulf %16, %16 : vector<8x32xf32>
    %cst_11 = arith.constant dense<0.000000e+00> : vector<8xf32>
    %18 = vector.multi_reduction <add>, %17, %cst_11 [1] : vector<8x32xf32> to vector<8xf32>
    %19 = vector.shape_cast %18 : vector<8xf32> to vector<8x1xf32>
    %cst_12 = arith.constant 3.200000e+01 : f32
    %20 = vector.broadcast %cst_12 : f32 to vector<8x1xf32>
    %21 = arith.divf %19, %20 : vector<8x1xf32>
    %22 = vector.broadcast %14 : vector<8x1xf32> to vector<8x32xf32>
    %23 = arith.subf %10, %22 : vector<8x32xf32>
    %cst_13 = arith.constant 9.99999974E-6 : f32
    %24 = vector.broadcast %cst_13 : f32 to vector<8x1xf32>
    %25 = arith.addf %21, %24 : vector<8x1xf32>
    %26 = math.rsqrt %25 : vector<8x1xf32>
    %27 = vector.broadcast %26 : vector<8x1xf32> to vector<8x32xf32>
    %28 = arith.mulf %23, %27 : vector<8x32xf32>
    %c0_14 = arith.constant 0 : index
    %c0_15 = arith.constant 0 : index
    %29 = vector.load %arg6[%c0_14, %c0_15] : memref<1x32xf32, #tpu.memory_space<vmem>>, vector<1x32xf32>
    %30 = vector.broadcast %29 : vector<1x32xf32> to vector<8x32xf32>
    %31 = arith.mulf %28, %30 : vector<8x32xf32>
    %c0_16 = arith.constant 0 : index
    %c0_17 = arith.constant 0 : index
    %32 = vector.load %arg7[%c0_16, %c0_17] : memref<1x32xf32, #tpu.memory_space<vmem>>, vector<1x32xf32>
    %33 = vector.broadcast %32 : vector<1x32xf32> to vector<8x32xf32>
    %34 = arith.addf %31, %33 : vector<8x32xf32>
    %35 = arith.truncf %34 : vector<8x32xf32> to vector<8x32xbf16>
    %c0_18 = arith.constant 0 : index
    %c0_19 = arith.constant 0 : index
    %c0_20 = arith.constant 0 : index
    %36 = vector.load %arg8[%c0_18, %c0_19, %c0_20] : memref<1x8x32xbf16, #tpu.memory_space<vmem>>, vector<1x8x32xbf16>
    %37 = vector.shape_cast %36 : vector<1x8x32xbf16> to vector<8x32xbf16>
    %38 = vector.shape_cast %35 : vector<8x32xbf16> to vector<1x8x32xbf16>
    tpu.vector_store %arg8[%c0_18, %c0_19, %c0_20], %38 {strides = array<i32>} : memref<1x8x32xbf16, #tpu.memory_space<vmem>>, vector<1x8x32xbf16>,
    return
  }
  func.func @transform_0(%arg0: i32, %arg1: i32) -> (i32, i32, i32) {
    %c0_i32 = arith.constant 0 : i32
    %c0_i32_0 = arith.constant 0 : i32
    return %arg0, %arg1, %c0_i32 : i32, i32, i32
  }
  func.func @transform_1(%arg0: i32, %arg1: i32) -> (i32, i32) {
    %c0_i32 = arith.constant 0 : i32
    %c0_i32_0 = arith.constant 0 : i32
    %c0_i32_1 = arith.constant 0 : i32
    return %c0_i32, %c0_i32_0 : i32, i32
  }
  func.func @transform_2(%arg0: i32, %arg1: i32) -> (i32, i32) {
    %c0_i32 = arith.constant 0 : i32
    %c0_i32_0 = arith.constant 0 : i32
    %c0_i32_1 = arith.constant 0 : i32
    return %c0_i32, %c0_i32_0 : i32, i32
  }
  func.func @transform_3(%arg0: i32, %arg1: i32) -> (i32, i32, i32) {
    %c0_i32 = arith.constant 0 : i32
    %c0_i32_0 = arith.constant 0 : i32
    return %arg0, %arg1, %c0_i32 : i32, i32, i32
  }
  func.func @transform_4(%arg0: i32, %arg1: i32) -> (i32, i32) {
    %c0_i32 = arith.constant 0 : i32
    %c0_i32_0 = arith.constant 0 : i32
    %c0_i32_1 = arith.constant 0 : i32
    return %c0_i32, %c0_i32_0 : i32, i32
  }
  func.func @transform_5(%arg0: i32, %arg1: i32) -> (i32, i32) {
    %c0_i32 = arith.constant 0 : i32
    %c0_i32_0 = arith.constant 0 : i32
    %c0_i32_1 = arith.constant 0 : i32
    return %c0_i32, %c0_i32_0 : i32, i32
  }
  func.func @transform_6(%arg0: i32, %arg1: i32) -> (i32, i32, i32) {
    %c0_i32 = arith.constant 0 : i32
    %c0_i32_0 = arith.constant 0 : i32
    return %arg0, %arg1, %c0_i32 : i32, i32, i32
  }
}

module attributes {stable_mosaic.version = 11 : i64} {
  func.func @_ffn_residual_ln_kernel(%arg0: i32, %arg1: i32, %arg2: i32, %arg3: memref<1x8x32xbf16, #tpu.memory_space<vmem>>, %arg4: memref<32x64xbf16, #tpu.memory_space<vmem>>, %arg5: memref<1x64xf32, #tpu.memory_space<vmem>>, %arg6: memref<64x32xbf16, #tpu.memory_space<vmem>>, %arg7: memref<1x32xf32, #tpu.memory_space<vmem>>, %arg8: memref<1x32xf32, #tpu.memory_space<vmem>>, %arg9: memref<1x32xf32, #tpu.memory_space<vmem>>, %arg10: memref<1x8x32xbf16, #tpu.memory_space<vmem>>, %arg11: memref<8x32xf32, #tpu.memory_space<vmem>>) attributes {dimension_semantics = [#tpu.dimension_semantics<parallel>, #tpu.dimension_semantics<parallel>, #tpu.dimension_semantics<arbitrary>], iteration_bounds = array<i64: 2, 1, 1>, scalar_prefetch = 0 : i64, scratch_operands = 1 : i64, tpu.core_type = #tpu.core_type<tc>, window_params = [{transform_indices = @transform_0, window_bounds = array<i64: 1, 8, 32>}, {transform_indices = @transform_1, window_bounds = array<i64: 32, 64>}, {transform_indices = @transform_2, window_bounds = array<i64: 1, 64>}, {transform_indices = @transform_3, window_bounds = array<i64: 64, 32>}, {pipeline_mode = #tpu.pipeline_mode<synchronous>, transform_indices = @transform_4, window_bounds = array<i64: 1, 32>}, {pipeline_mode = #tpu.pipeline_mode<synchronous>, transform_indices = @transform_5, window_bounds = array<i64: 1, 32>}, {pipeline_mode = #tpu.pipeline_mode<synchronous>, transform_indices = @transform_6, window_bounds = array<i64: 1, 32>}, {transform_indices = @transform_7, window_bounds = array<i64: 1, 8, 32>}]} {
    %c0_i32 = arith.constant 0 : i32
    %0 = arith.cmpi eq, %arg2, %c0_i32 : i32
    %1 = arith.extui %0 : i1 to i32
    %c0_i32_0 = arith.constant 0 : i32
    %2 = arith.cmpi ne, %1, %c0_i32_0 : i32
    scf.if %2 {
      %cst_17 = arith.constant 0.000000e+00 : f32
      %21 = vector.broadcast %cst_17 : f32 to vector<8x32xf32>
      %c0_18 = arith.constant 0 : index
      %c0_19 = arith.constant 0 : index
      %22 = vector.load %arg11[%c0_18, %c0_19] : memref<8x32xf32, #tpu.memory_space<vmem>>, vector<8x32xf32>
      tpu.vector_store %arg11[%c0_18, %c0_19], %21 {strides = array<i32>} : memref<8x32xf32, #tpu.memory_space<vmem>>, vector<8x32xf32>,
    } else {
    }
    %c0 = arith.constant 0 : index
    %c0_1 = arith.constant 0 : index
    %c0_2 = arith.constant 0 : index
    %3 = vector.load %arg3[%c0, %c0_1, %c0_2] : memref<1x8x32xbf16, #tpu.memory_space<vmem>>, vector<1x8x32xbf16>
    %4 = vector.shape_cast %3 : vector<1x8x32xbf16> to vector<8x32xbf16>
    %c0_3 = arith.constant 0 : index
    %c0_4 = arith.constant 0 : index
    %5 = vector.load %arg4[%c0_3, %c0_4] : memref<32x64xbf16, #tpu.memory_space<vmem>>, vector<32x64xbf16>
    %cst = arith.constant dense<0.000000e+00> : vector<8x64xf32>
    %6 = tpu.matmul %4, %5, %cst {dimension_numbers = #tpu.dot_dimension_numbers<[1], [0], [0], [1], [0, 0, 1, 1], [], []>} : vector<8x32xbf16>, vector<32x64xbf16>, vector<8x64xf32> -> vector<8x64xf32>
    %c0_5 = arith.constant 0 : index
    %c0_6 = arith.constant 0 : index
    %7 = vector.load %arg5[%c0_5, %c0_6] : memref<1x64xf32, #tpu.memory_space<vmem>>, vector<1x64xf32>
    %8 = vector.broadcast %7 : vector<1x64xf32> to vector<8x64xf32>
    %9 = arith.addf %6, %8 : vector<8x64xf32>
    %cst_7 = arith.constant 0.000000e+00 : f32
    %10 = vector.broadcast %cst_7 : f32 to vector<8x64xf32>
    %11 = arith.maximumf %9, %10 : vector<8x64xf32>
    %c0_8 = arith.constant 0 : index
    %c0_9 = arith.constant 0 : index
    %12 = vector.load %arg11[%c0_8, %c0_9] : memref<8x32xf32, #tpu.memory_space<vmem>>, vector<8x32xf32>
    %13 = arith.truncf %11 : vector<8x64xf32> to vector<8x64xbf16>
    %c0_10 = arith.constant 0 : index
    %c0_11 = arith.constant 0 : index
    %14 = vector.load %arg6[%c0_10, %c0_11] : memref<64x32xbf16, #tpu.memory_space<vmem>>, vector<64x32xbf16>
    %cst_12 = arith.constant dense<0.000000e+00> : vector<8x32xf32>
    %15 = tpu.matmul %13, %14, %cst_12 {dimension_numbers = #tpu.dot_dimension_numbers<[1], [0], [0], [1], [0, 0, 1, 1], [], []>} : vector<8x64xbf16>, vector<64x32xbf16>, vector<8x32xf32> -> vector<8x32xf32>
    %16 = arith.addf %12, %15 : vector<8x32xf32>
    %c0_13 = arith.constant 0 : index
    %c0_14 = arith.constant 0 : index
    %17 = vector.load %arg11[%c0_13, %c0_14] : memref<8x32xf32, #tpu.memory_space<vmem>>, vector<8x32xf32>
    tpu.vector_store %arg11[%c0_13, %c0_14], %16 {strides = array<i32>} : memref<8x32xf32, #tpu.memory_space<vmem>>, vector<8x32xf32>,
    %c0_i32_15 = arith.constant 0 : i32
    %18 = arith.cmpi eq, %arg2, %c0_i32_15 : i32
    %19 = arith.extui %18 : i1 to i32
    %c0_i32_16 = arith.constant 0 : i32
    %20 = arith.cmpi ne, %19, %c0_i32_16 : i32
    scf.if %20 {
      %c0_17 = arith.constant 0 : index
      %c0_18 = arith.constant 0 : index
      %21 = vector.load %arg11[%c0_17, %c0_18] : memref<8x32xf32, #tpu.memory_space<vmem>>, vector<8x32xf32>
      %c0_19 = arith.constant 0 : index
      %c0_20 = arith.constant 0 : index
      %22 = vector.load %arg7[%c0_19, %c0_20] : memref<1x32xf32, #tpu.memory_space<vmem>>, vector<1x32xf32>
      %23 = vector.broadcast %22 : vector<1x32xf32> to vector<8x32xf32>
      %24 = arith.addf %21, %23 : vector<8x32xf32>
      %c0_21 = arith.constant 0 : index
      %c0_22 = arith.constant 0 : index
      %c0_23 = arith.constant 0 : index
      %25 = vector.load %arg3[%c0_21, %c0_22, %c0_23] : memref<1x8x32xbf16, #tpu.memory_space<vmem>>, vector<1x8x32xbf16>
      %26 = vector.shape_cast %25 : vector<1x8x32xbf16> to vector<8x32xbf16>
      %27 = arith.extf %26 : vector<8x32xbf16> to vector<8x32xf32>
      %28 = arith.addf %24, %27 : vector<8x32xf32>
      %cst_24 = arith.constant dense<0.000000e+00> : vector<8xf32>
      %29 = vector.multi_reduction <add>, %28, %cst_24 [1] : vector<8x32xf32> to vector<8xf32>
      %30 = vector.shape_cast %29 : vector<8xf32> to vector<8x1xf32>
      %cst_25 = arith.constant 3.200000e+01 : f32
      %31 = vector.broadcast %cst_25 : f32 to vector<8x1xf32>
      %32 = arith.divf %30, %31 : vector<8x1xf32>
      %33 = vector.broadcast %32 : vector<8x1xf32> to vector<8x32xf32>
      %34 = arith.subf %28, %33 : vector<8x32xf32>
      %35 = arith.mulf %34, %34 : vector<8x32xf32>
      %cst_26 = arith.constant dense<0.000000e+00> : vector<8xf32>
      %36 = vector.multi_reduction <add>, %35, %cst_26 [1] : vector<8x32xf32> to vector<8xf32>
      %37 = vector.shape_cast %36 : vector<8xf32> to vector<8x1xf32>
      %cst_27 = arith.constant 3.200000e+01 : f32
      %38 = vector.broadcast %cst_27 : f32 to vector<8x1xf32>
      %39 = arith.divf %37, %38 : vector<8x1xf32>
      %40 = vector.broadcast %32 : vector<8x1xf32> to vector<8x32xf32>
      %41 = arith.subf %28, %40 : vector<8x32xf32>
      %cst_28 = arith.constant 9.99999974E-6 : f32
      %42 = vector.broadcast %cst_28 : f32 to vector<8x1xf32>
      %43 = arith.addf %39, %42 : vector<8x1xf32>
      %44 = math.rsqrt %43 : vector<8x1xf32>
      %45 = vector.broadcast %44 : vector<8x1xf32> to vector<8x32xf32>
      %46 = arith.mulf %41, %45 : vector<8x32xf32>
      %c0_29 = arith.constant 0 : index
      %c0_30 = arith.constant 0 : index
      %47 = vector.load %arg8[%c0_29, %c0_30] : memref<1x32xf32, #tpu.memory_space<vmem>>, vector<1x32xf32>
      %48 = vector.broadcast %47 : vector<1x32xf32> to vector<8x32xf32>
      %49 = arith.mulf %46, %48 : vector<8x32xf32>
      %c0_31 = arith.constant 0 : index
      %c0_32 = arith.constant 0 : index
      %50 = vector.load %arg9[%c0_31, %c0_32] : memref<1x32xf32, #tpu.memory_space<vmem>>, vector<1x32xf32>
      %51 = vector.broadcast %50 : vector<1x32xf32> to vector<8x32xf32>
      %52 = arith.addf %49, %51 : vector<8x32xf32>
      %53 = arith.truncf %52 : vector<8x32xf32> to vector<8x32xbf16>
      %c0_33 = arith.constant 0 : index
      %c0_34 = arith.constant 0 : index
      %c0_35 = arith.constant 0 : index
      %54 = vector.load %arg10[%c0_33, %c0_34, %c0_35] : memref<1x8x32xbf16, #tpu.memory_space<vmem>>, vector<1x8x32xbf16>
      %55 = vector.shape_cast %54 : vector<1x8x32xbf16> to vector<8x32xbf16>
      %56 = vector.shape_cast %53 : vector<8x32xbf16> to vector<1x8x32xbf16>
      tpu.vector_store %arg10[%c0_33, %c0_34, %c0_35], %56 {strides = array<i32>} : memref<1x8x32xbf16, #tpu.memory_space<vmem>>, vector<1x8x32xbf16>,
    } else {
    }
    return
  }
  func.func @transform_0(%arg0: i32, %arg1: i32, %arg2: i32) -> (i32, i32, i32) {
    %c0_i32 = arith.constant 0 : i32
    %c0_i32_0 = arith.constant 0 : i32
    return %arg0, %arg1, %c0_i32 : i32, i32, i32
  }
  func.func @transform_1(%arg0: i32, %arg1: i32, %arg2: i32) -> (i32, i32) {
    %c0_i32 = arith.constant 0 : i32
    %c0_i32_0 = arith.constant 0 : i32
    return %c0_i32, %arg2 : i32, i32
  }
  func.func @transform_2(%arg0: i32, %arg1: i32, %arg2: i32) -> (i32, i32) {
    %c0_i32 = arith.constant 0 : i32
    %c0_i32_0 = arith.constant 0 : i32
    return %c0_i32, %arg2 : i32, i32
  }
  func.func @transform_3(%arg0: i32, %arg1: i32, %arg2: i32) -> (i32, i32) {
    %c0_i32 = arith.constant 0 : i32
    %c0_i32_0 = arith.constant 0 : i32
    return %arg2, %c0_i32 : i32, i32
  }
  func.func @transform_4(%arg0: i32, %arg1: i32, %arg2: i32) -> (i32, i32) {
    %c0_i32 = arith.constant 0 : i32
    %c0_i32_0 = arith.constant 0 : i32
    %c0_i32_1 = arith.constant 0 : i32
    return %c0_i32, %c0_i32_0 : i32, i32
  }
  func.func @transform_5(%arg0: i32, %arg1: i32, %arg2: i32) -> (i32, i32) {
    %c0_i32 = arith.constant 0 : i32
    %c0_i32_0 = arith.constant 0 : i32
    %c0_i32_1 = arith.constant 0 : i32
    return %c0_i32, %c0_i32_0 : i32, i32
  }
  func.func @transform_6(%arg0: i32, %arg1: i32, %arg2: i32) -> (i32, i32) {
    %c0_i32 = arith.constant 0 : i32
    %c0_i32_0 = arith.constant 0 : i32
    %c0_i32_1 = arith.constant 0 : i32
    return %c0_i32, %c0_i32_0 : i32, i32
  }
  func.func @transform_7(%arg0: i32, %arg1: i32, %arg2: i32) -> (i32, i32, i32) {
    %c0_i32 = arith.constant 0 : i32
    %c0_i32_0 = arith.constant 0 : i32
    return %arg0, %arg1, %c0_i32 : i32, i32, i32
  }
}

module attributes {stable_mosaic.version = 11 : i64} {
  func.func @_attn_kernel(%arg0: i32, %arg1: i32, %arg2: memref<1x1x8x32xbf16, #tpu.memory_space<vmem>>, %arg3: memref<1x1x8x32xbf16, #tpu.memory_space<vmem>>, %arg4: memref<1x1x8x32xbf16, #tpu.memory_space<vmem>>, %arg5: memref<1x1x8xf32, #tpu.memory_space<vmem>>, %arg6: memref<1x8x32xbf16, #tpu.memory_space<vmem>>, %arg7: memref<1x4x8x8xf32, #tpu.memory_space<vmem>>) attributes {dimension_semantics = [#tpu.dimension_semantics<parallel>, #tpu.dimension_semantics<parallel>], iteration_bounds = array<i64: 2, 1>, scalar_prefetch = 0 : i64, scratch_operands = 0 : i64, tpu.core_type = #tpu.core_type<tc>, window_params = [{transform_indices = @transform_0, window_bounds = array<i64: 1, 1, 8, 32>}, {transform_indices = @transform_1, window_bounds = array<i64: 1, 1, 8, 32>}, {transform_indices = @transform_2, window_bounds = array<i64: 1, 1, 8, 32>}, {transform_indices = @transform_3, window_bounds = array<i64: 1, 1, 8>}, {transform_indices = @transform_4, window_bounds = array<i64: 1, 8, 32>}, {transform_indices = @transform_5, window_bounds = array<i64: 1, 4, 8, 8>}]} {
    %c0 = arith.constant 0 : index
    %c0_0 = arith.constant 0 : index
    %c0_1 = arith.constant 0 : index
    %c0_2 = arith.constant 0 : index
    %0 = vector.load %arg2[%c0, %c0_0, %c0_1, %c0_2] : memref<1x1x8x32xbf16, #tpu.memory_space<vmem>>, vector<1x1x8x32xbf16>
    %1 = vector.shape_cast %0 : vector<1x1x8x32xbf16> to vector<8x32xbf16>
    %c0_3 = arith.constant 0 : index
    %c0_4 = arith.constant 0 : index
    %c0_5 = arith.constant 0 : index
    %c0_6 = arith.constant 0 : index
    %2 = vector.load %arg3[%c0_3, %c0_4, %c0_5, %c0_6] : memref<1x1x8x32xbf16, #tpu.memory_space<vmem>>, vector<1x1x8x32xbf16>
    %3 = vector.shape_cast %2 : vector<1x1x8x32xbf16> to vector<8x32xbf16>
    %c0_7 = arith.constant 0 : index
    %c0_8 = arith.constant 0 : index
    %c0_9 = arith.constant 0 : index
    %c0_10 = arith.constant 0 : index
    %4 = vector.load %arg4[%c0_7, %c0_8, %c0_9, %c0_10] : memref<1x1x8x32xbf16, #tpu.memory_space<vmem>>, vector<1x1x8x32xbf16>
    %5 = vector.shape_cast %4 : vector<1x1x8x32xbf16> to vector<8x32xbf16>
    %c0_11 = arith.constant 0 : index
    %c0_12 = arith.constant 0 : index
    %c0_13 = arith.constant 0 : index
    %6 = vector.load %arg5[%c0_11, %c0_12, %c0_13] : memref<1x1x8xf32, #tpu.memory_space<vmem>>, vector<1x1x8xf32>
    %7 = vector.shape_cast %6 : vector<1x1x8xf32> to vector<1x8xf32>
    %8 = vector.extract_strided_slice %1 {offsets = [0, 0], sizes = [8, 8], strides = [1, 1]} : vector<8x32xbf16> to vector<8x8xbf16>
    %cst = arith.constant 3.535160e-01 : bf16
    %9 = vector.broadcast %cst : bf16 to vector<8x8xbf16>
    %10 = arith.mulf %8, %9 : vector<8x8xbf16>
    %11 = vector.extract_strided_slice %3 {offsets = [0, 0], sizes = [8, 8], strides = [1, 1]} : vector<8x32xbf16> to vector<8x8xbf16>
    %cst_14 = arith.constant dense<0.000000e+00> : vector<8x8xf32>
    %12 = tpu.matmul %10, %11, %cst_14 {dimension_numbers = #tpu.dot_dimension_numbers<[1], [1], [0], [0], [0, 0, 1, 0], [], []>} : vector<8x8xbf16>, vector<8x8xbf16>, vector<8x8xf32> -> vector<8x8xf32>
    %cst_15 = arith.constant 0.000000e+00 : f32
    %13 = vector.broadcast %cst_15 : f32 to vector<1x8xf32>
    %14 = arith.cmpf ogt, %7, %13 : vector<1x8xf32>
    %cst_16 = arith.constant -1.000000e+10 : f32
    %15 = vector.shape_cast %14 : vector<1x8xi1> to vector<1x8xi1>
    %16 = vector.broadcast %15 : vector<1x8xi1> to vector<8x8xi1>
    %17 = vector.broadcast %cst_16 : f32 to vector<8x8xf32>
    %18 = arith.select %16, %12, %17 : vector<8x8xi1>, vector<8x8xf32>
    %cst_17 = arith.constant dense<0xFF800000> : vector<8xf32>
    %19 = vector.multi_reduction <maximumf>, %18, %cst_17 [1] : vector<8x8xf32> to vector<8xf32>
    %20 = vector.shape_cast %19 : vector<8xf32> to vector<8x1xf32>
    %21 = vector.broadcast %20 : vector<8x1xf32> to vector<8x8xf32>
    %22 = arith.subf %18, %21 : vector<8x8xf32>
    %23 = math.exp %22 : vector<8x8xf32>
    %cst_18 = arith.constant dense<0.000000e+00> : vector<8xf32>
    %24 = vector.multi_reduction <add>, %23, %cst_18 [1] : vector<8x8xf32> to vector<8xf32>
    %25 = vector.shape_cast %24 : vector<8xf32> to vector<8x1xf32>
    %26 = vector.broadcast %25 : vector<8x1xf32> to vector<8x8xf32>
    %27 = arith.divf %23, %26 : vector<8x8xf32>
    %28 = arith.truncf %27 : vector<8x8xf32> to vector<8x8xbf16>
    %29 = vector.extract_strided_slice %5 {offsets = [0, 0], sizes = [8, 8], strides = [1, 1]} : vector<8x32xbf16> to vector<8x8xbf16>
    %cst_19 = arith.constant dense<0.000000e+00> : vector<8x8xf32>
    %30 = tpu.matmul %28, %29, %cst_19 {dimension_numbers = #tpu.dot_dimension_numbers<[1], [0], [0], [1], [0, 0, 1, 1], [], []>} : vector<8x8xbf16>, vector<8x8xbf16>, vector<8x8xf32> -> vector<8x8xf32>
    %c0_20 = arith.constant 0 : index
    %c0_21 = arith.constant 0 : index
    %c0_22 = arith.constant 0 : index
    %c0_23 = arith.constant 0 : index
    %31 = vector.load %arg7[%c0_20, %c0_21, %c0_22, %c0_23] : memref<1x4x8x8xf32, #tpu.memory_space<vmem>>, vector<1x1x8x8xf32>
    %32 = vector.shape_cast %31 : vector<1x1x8x8xf32> to vector<8x8xf32>
    %33 = vector.shape_cast %27 : vector<8x8xf32> to vector<1x1x8x8xf32>
    tpu.vector_store %arg7[%c0_20, %c0_21, %c0_22, %c0_23], %33 {strides = array<i32>} : memref<1x4x8x8xf32, #tpu.memory_space<vmem>>, vector<1x1x8x8xf32>,
    %34 = vector.extract_strided_slice %1 {offsets = [0, 8], sizes = [8, 8], strides = [1, 1]} : vector<8x32xbf16> to vector<8x8xbf16>
    %cst_24 = arith.constant 3.535160e-01 : bf16
    %35 = vector.broadcast %cst_24 : bf16 to vector<8x8xbf16>
    %36 = arith.mulf %34, %35 : vector<8x8xbf16>
    %37 = vector.extract_strided_slice %3 {offsets = [0, 8], sizes = [8, 8], strides = [1, 1]} : vector<8x32xbf16> to vector<8x8xbf16>
    %cst_25 = arith.constant dense<0.000000e+00> : vector<8x8xf32>
    %38 = tpu.matmul %36, %37, %cst_25 {dimension_numbers = #tpu.dot_dimension_numbers<[1], [1], [0], [0], [0, 0, 1, 0], [], []>} : vector<8x8xbf16>, vector<8x8xbf16>, vector<8x8xf32> -> vector<8x8xf32>
    %cst_26 = arith.constant 0.000000e+00 : f32
    %39 = vector.broadcast %cst_26 : f32 to vector<1x8xf32>
    %40 = arith.cmpf ogt, %7, %39 : vector<1x8xf32>
    %cst_27 = arith.constant -1.000000e+10 : f32
    %41 = vector.shape_cast %40 : vector<1x8xi1> to vector<1x8xi1>
    %42 = vector.broadcast %41 : vector<1x8xi1> to vector<8x8xi1>
    %43 = vector.broadcast %cst_27 : f32 to vector<8x8xf32>
    %44 = arith.select %42, %38, %43 : vector<8x8xi1>, vector<8x8xf32>
    %cst_28 = arith.constant dense<0xFF800000> : vector<8xf32>
    %45 = vector.multi_reduction <maximumf>, %44, %cst_28 [1] : vector<8x8xf32> to vector<8xf32>
    %46 = vector.shape_cast %45 : vector<8xf32> to vector<8x1xf32>
    %47 = vector.broadcast %46 : vector<8x1xf32> to vector<8x8xf32>
    %48 = arith.subf %44, %47 : vector<8x8xf32>
    %49 = math.exp %48 : vector<8x8xf32>
    %cst_29 = arith.constant dense<0.000000e+00> : vector<8xf32>
    %50 = vector.multi_reduction <add>, %49, %cst_29 [1] : vector<8x8xf32> to vector<8xf32>
    %51 = vector.shape_cast %50 : vector<8xf32> to vector<8x1xf32>
    %52 = vector.broadcast %51 : vector<8x1xf32> to vector<8x8xf32>
    %53 = arith.divf %49, %52 : vector<8x8xf32>
    %54 = arith.truncf %53 : vector<8x8xf32> to vector<8x8xbf16>
    %55 = vector.extract_strided_slice %5 {offsets = [0, 8], sizes = [8, 8], strides = [1, 1]} : vector<8x32xbf16> to vector<8x8xbf16>
    %cst_30 = arith.constant dense<0.000000e+00> : vector<8x8xf32>
    %56 = tpu.matmul %54, %55, %cst_30 {dimension_numbers = #tpu.dot_dimension_numbers<[1], [0], [0], [1], [0, 0, 1, 1], [], []>} : vector<8x8xbf16>, vector<8x8xbf16>, vector<8x8xf32> -> vector<8x8xf32>
    %c0_31 = arith.constant 0 : index
    %c1 = arith.constant 1 : index
    %c0_32 = arith.constant 0 : index
    %c0_33 = arith.constant 0 : index
    %57 = vector.load %arg7[%c0_31, %c1, %c0_32, %c0_33] : memref<1x4x8x8xf32, #tpu.memory_space<vmem>>, vector<1x1x8x8xf32>
    %58 = vector.shape_cast %57 : vector<1x1x8x8xf32> to vector<8x8xf32>
    %59 = vector.shape_cast %53 : vector<8x8xf32> to vector<1x1x8x8xf32>
    tpu.vector_store %arg7[%c0_31, %c1, %c0_32, %c0_33], %59 {strides = array<i32>} : memref<1x4x8x8xf32, #tpu.memory_space<vmem>>, vector<1x1x8x8xf32>,
    %60 = vector.extract_strided_slice %1 {offsets = [0, 16], sizes = [8, 8], strides = [1, 1]} : vector<8x32xbf16> to vector<8x8xbf16>
    %cst_34 = arith.constant 3.535160e-01 : bf16
    %61 = vector.broadcast %cst_34 : bf16 to vector<8x8xbf16>
    %62 = arith.mulf %60, %61 : vector<8x8xbf16>
    %63 = vector.extract_strided_slice %3 {offsets = [0, 16], sizes = [8, 8], strides = [1, 1]} : vector<8x32xbf16> to vector<8x8xbf16>
    %cst_35 = arith.constant dense<0.000000e+00> : vector<8x8xf32>
    %64 = tpu.matmul %62, %63, %cst_35 {dimension_numbers = #tpu.dot_dimension_numbers<[1], [1], [0], [0], [0, 0, 1, 0], [], []>} : vector<8x8xbf16>, vector<8x8xbf16>, vector<8x8xf32> -> vector<8x8xf32>
    %cst_36 = arith.constant 0.000000e+00 : f32
    %65 = vector.broadcast %cst_36 : f32 to vector<1x8xf32>
    %66 = arith.cmpf ogt, %7, %65 : vector<1x8xf32>
    %cst_37 = arith.constant -1.000000e+10 : f32
    %67 = vector.shape_cast %66 : vector<1x8xi1> to vector<1x8xi1>
    %68 = vector.broadcast %67 : vector<1x8xi1> to vector<8x8xi1>
    %69 = vector.broadcast %cst_37 : f32 to vector<8x8xf32>
    %70 = arith.select %68, %64, %69 : vector<8x8xi1>, vector<8x8xf32>
    %cst_38 = arith.constant dense<0xFF800000> : vector<8xf32>
    %71 = vector.multi_reduction <maximumf>, %70, %cst_38 [1] : vector<8x8xf32> to vector<8xf32>
    %72 = vector.shape_cast %71 : vector<8xf32> to vector<8x1xf32>
    %73 = vector.broadcast %72 : vector<8x1xf32> to vector<8x8xf32>
    %74 = arith.subf %70, %73 : vector<8x8xf32>
    %75 = math.exp %74 : vector<8x8xf32>
    %cst_39 = arith.constant dense<0.000000e+00> : vector<8xf32>
    %76 = vector.multi_reduction <add>, %75, %cst_39 [1] : vector<8x8xf32> to vector<8xf32>
    %77 = vector.shape_cast %76 : vector<8xf32> to vector<8x1xf32>
    %78 = vector.broadcast %77 : vector<8x1xf32> to vector<8x8xf32>
    %79 = arith.divf %75, %78 : vector<8x8xf32>
    %80 = arith.truncf %79 : vector<8x8xf32> to vector<8x8xbf16>
    %81 = vector.extract_strided_slice %5 {offsets = [0, 16], sizes = [8, 8], strides = [1, 1]} : vector<8x32xbf16> to vector<8x8xbf16>
    %cst_40 = arith.constant dense<0.000000e+00> : vector<8x8xf32>
    %82 = tpu.matmul %80, %81, %cst_40 {dimension_numbers = #tpu.dot_dimension_numbers<[1], [0], [0], [1], [0, 0, 1, 1], [], []>} : vector<8x8xbf16>, vector<8x8xbf16>, vector<8x8xf32> -> vector<8x8xf32>
    %c0_41 = arith.constant 0 : index
    %c2 = arith.constant 2 : index
    %c0_42 = arith.constant 0 : index
    %c0_43 = arith.constant 0 : index
    %83 = vector.load %arg7[%c0_41, %c2, %c0_42, %c0_43] : memref<1x4x8x8xf32, #tpu.memory_space<vmem>>, vector<1x1x8x8xf32>
    %84 = vector.shape_cast %83 : vector<1x1x8x8xf32> to vector<8x8xf32>
    %85 = vector.shape_cast %79 : vector<8x8xf32> to vector<1x1x8x8xf32>
    tpu.vector_store %arg7[%c0_41, %c2, %c0_42, %c0_43], %85 {strides = array<i32>} : memref<1x4x8x8xf32, #tpu.memory_space<vmem>>, vector<1x1x8x8xf32>,
    %86 = vector.extract_strided_slice %1 {offsets = [0, 24], sizes = [8, 8], strides = [1, 1]} : vector<8x32xbf16> to vector<8x8xbf16>
    %cst_44 = arith.constant 3.535160e-01 : bf16
    %87 = vector.broadcast %cst_44 : bf16 to vector<8x8xbf16>
    %88 = arith.mulf %86, %87 : vector<8x8xbf16>
    %89 = vector.extract_strided_slice %3 {offsets = [0, 24], sizes = [8, 8], strides = [1, 1]} : vector<8x32xbf16> to vector<8x8xbf16>
    %cst_45 = arith.constant dense<0.000000e+00> : vector<8x8xf32>
    %90 = tpu.matmul %88, %89, %cst_45 {dimension_numbers = #tpu.dot_dimension_numbers<[1], [1], [0], [0], [0, 0, 1, 0], [], []>} : vector<8x8xbf16>, vector<8x8xbf16>, vector<8x8xf32> -> vector<8x8xf32>
    %cst_46 = arith.constant 0.000000e+00 : f32
    %91 = vector.broadcast %cst_46 : f32 to vector<1x8xf32>
    %92 = arith.cmpf ogt, %7, %91 : vector<1x8xf32>
    %cst_47 = arith.constant -1.000000e+10 : f32
    %93 = vector.shape_cast %92 : vector<1x8xi1> to vector<1x8xi1>
    %94 = vector.broadcast %93 : vector<1x8xi1> to vector<8x8xi1>
    %95 = vector.broadcast %cst_47 : f32 to vector<8x8xf32>
    %96 = arith.select %94, %90, %95 : vector<8x8xi1>, vector<8x8xf32>
    %cst_48 = arith.constant dense<0xFF800000> : vector<8xf32>
    %97 = vector.multi_reduction <maximumf>, %96, %cst_48 [1] : vector<8x8xf32> to vector<8xf32>
    %98 = vector.shape_cast %97 : vector<8xf32> to vector<8x1xf32>
    %99 = vector.broadcast %98 : vector<8x1xf32> to vector<8x8xf32>
    %100 = arith.subf %96, %99 : vector<8x8xf32>
    %101 = math.exp %100 : vector<8x8xf32>
    %cst_49 = arith.constant dense<0.000000e+00> : vector<8xf32>
    %102 = vector.multi_reduction <add>, %101, %cst_49 [1] : vector<8x8xf32> to vector<8xf32>
    %103 = vector.shape_cast %102 : vector<8xf32> to vector<8x1xf32>
    %104 = vector.broadcast %103 : vector<8x1xf32> to vector<8x8xf32>
    %105 = arith.divf %101, %104 : vector<8x8xf32>
    %106 = arith.truncf %105 : vector<8x8xf32> to vector<8x8xbf16>
    %107 = vector.extract_strided_slice %5 {offsets = [0, 24], sizes = [8, 8], strides = [1, 1]} : vector<8x32xbf16> to vector<8x8xbf16>
    %cst_50 = arith.constant dense<0.000000e+00> : vector<8x8xf32>
    %108 = tpu.matmul %106, %107, %cst_50 {dimension_numbers = #tpu.dot_dimension_numbers<[1], [0], [0], [1], [0, 0, 1, 1], [], []>} : vector<8x8xbf16>, vector<8x8xbf16>, vector<8x8xf32> -> vector<8x8xf32>
    %c0_51 = arith.constant 0 : index
    %c3 = arith.constant 3 : index
    %c0_52 = arith.constant 0 : index
    %c0_53 = arith.constant 0 : index
    %109 = vector.load %arg7[%c0_51, %c3, %c0_52, %c0_53] : memref<1x4x8x8xf32, #tpu.memory_space<vmem>>, vector<1x1x8x8xf32>
    %110 = vector.shape_cast %109 : vector<1x1x8x8xf32> to vector<8x8xf32>
    %111 = vector.shape_cast %105 : vector<8x8xf32> to vector<1x1x8x8xf32>
    tpu.vector_store %arg7[%c0_51, %c3, %c0_52, %c0_53], %111 {strides = array<i32>} : memref<1x4x8x8xf32, #tpu.memory_space<vmem>>, vector<1x1x8x8xf32>,
    %112 = tpu.concatenate %30, %56, %82, %108 in 1 : vector<8x8xf32>, vector<8x8xf32>, vector<8x8xf32>, vector<8x8xf32> -> vector<8x32xf32>
    %113 = arith.truncf %112 : vector<8x32xf32> to vector<8x32xbf16>
    %c0_54 = arith.constant 0 : index
    %c0_55 = arith.constant 0 : index
    %c0_56 = arith.constant 0 : index
    %114 = vector.load %arg6[%c0_54, %c0_55, %c0_56] : memref<1x8x32xbf16, #tpu.memory_space<vmem>>, vector<1x8x32xbf16>
    %115 = vector.shape_cast %114 : vector<1x8x32xbf16> to vector<8x32xbf16>
    %116 = vector.shape_cast %113 : vector<8x32xbf16> to vector<1x8x32xbf16>
    tpu.vector_store %arg6[%c0_54, %c0_55, %c0_56], %116 {strides = array<i32>} : memref<1x8x32xbf16, #tpu.memory_space<vmem>>, vector<1x8x32xbf16>,
    return
  }
  func.func @transform_0(%arg0: i32, %arg1: i32) -> (i32, i32, i32, i32) {
    %c0_i32 = arith.constant 0 : i32
    %c0_i32_0 = arith.constant 0 : i32
    %c0_i32_1 = arith.constant 0 : i32
    return %arg0, %c0_i32, %arg1, %c0_i32_0 : i32, i32, i32, i32
  }
  func.func @transform_1(%arg0: i32, %arg1: i32) -> (i32, i32, i32, i32) {
    %c1_i32 = arith.constant 1 : i32
    %c0_i32 = arith.constant 0 : i32
    %c0_i32_0 = arith.constant 0 : i32
    %c0_i32_1 = arith.constant 0 : i32
    return %arg0, %c1_i32, %c0_i32, %c0_i32_0 : i32, i32, i32, i32
  }
  func.func @transform_2(%arg0: i32, %arg1: i32) -> (i32, i32, i32, i32) {
    %c2_i32 = arith.constant 2 : i32
    %c0_i32 = arith.constant 0 : i32
    %c0_i32_0 = arith.constant 0 : i32
    %c0_i32_1 = arith.constant 0 : i32
    return %arg0, %c2_i32, %c0_i32, %c0_i32_0 : i32, i32, i32, i32
  }
  func.func @transform_3(%arg0: i32, %arg1: i32) -> (i32, i32, i32) {
    %c0_i32 = arith.constant 0 : i32
    %c0_i32_0 = arith.constant 0 : i32
    %c0_i32_1 = arith.constant 0 : i32
    return %arg0, %c0_i32, %c0_i32_0 : i32, i32, i32
  }
  func.func @transform_4(%arg0: i32, %arg1: i32) -> (i32, i32, i32) {
    %c0_i32 = arith.constant 0 : i32
    %c0_i32_0 = arith.constant 0 : i32
    return %arg0, %arg1, %c0_i32 : i32, i32, i32
  }
  func.func @transform_5(%arg0: i32, %arg1: i32) -> (i32, i32, i32, i32) {
    %c0_i32 = arith.constant 0 : i32
    %c0_i32_0 = arith.constant 0 : i32
    %c0_i32_1 = arith.constant 0 : i32
    return %arg0, %c0_i32, %arg1, %c0_i32_0 : i32, i32, i32, i32
  }
}

</mosaic_0001>

<bundles_post_ra>
// kernel: encoder_forward.9
= control target key start
LH: loop header
LB: loop body
LE: loop exit
PB: predicated region body
PF: predicated region fallthrough
CT: control target
= control target key end

     0   :  { %s459_s15 = smov 0   ;;  %s461_s16 = smov 0   ;;  %s498_s0 = inlined_call_operand.vmem [shape: f32[2,8,16], index: 0, kind: input, shape index: {}]   ;;  %s499_s1 = inlined_call_operand.vmem [shape: f32[8,16], index: 1, kind: input, shape index: {}]   ;;  %s500_s2 = inlined_call_operand.vmem [shape: bf16[16,32], index: 2, kind: input, shape index: {}]   ;;  %s501_s3 = inlined_call_operand.vmem [shape: f32[1,32], index: 3, kind: input, shape index: {}]   ;;  %s502_s4 = inlined_call_operand.vmem [shape: bf16[2,8,32], index: 4, kind: output, shape index: {}]  }
   0x1   :  { %s463_s17 = smov 0  }
   0x2 LB: > { %s26_s18 = sadd.s32 1, %s428_s16  ;;  %p374_p0 = scmp.ge.s32.totalorder %s432_s17, 1  ;;  %s432_s17 = sphi %s463_s17, %s14_s17   ;;  %s428_s16 = sphi %s461_s16, %s504_s16   ;;  %s424_s15 = sphi %s459_s15, %s503_s15  }
   0x3   : > { %p28_p1 = scmp.ge.s32.totalorder %s26_s18, 2  ;;  %p189_p2 = scmp.lt.s32.totalorder %s432_s17, 3 }
   0x5   : > { %s506_s18 = smov (%p28_p1, %s26_s18), 0  ;;  %p190_p3 = pnand %p374_p0, %p189_p2 }
   0x6   : > { %p223_p4 = scmp.lt.s32.totalorder (!%p190_p3), %s424_s15, 1 }
   0x7   : > { %193 = sbr.rel (%p190_p3) target bundleno = 156 (0x9c), region = 36 }
   0xc   : > { %v384_v0 = vld [vmem:[%s500_s2] sm:$0xff]  ;;  %s508_s15 = smov (!%p223_p4, %s424_s15), 1  ;;  %vm259_vm0 = vcmask 130048   ;;  %vm277_vm1 = vcmask 257024  }
   0xd   : > { %270 = vmatpush.bf16.msra.mxu0 %v384_v0  ;;  %s375_s21 = sshll.u32 %s508_s15, 3  ;;  %v244_v2 = vld [vmem:[%s499_s1] sm:$0xff]  ;;  %s376_s29 = sshll.u32 %s508_s15, 2 }
   0xe   : > { %s229_s24 = scalar_lea.vmem %s498_s0, %s375_s21  ;;  %v409_v6 = vld [vmem:[%s501_s3] ss:$0 sm:$0xff]  ;;  %s240_s6 = scalar_lea.vmem %s502_s4, %s376_s29 }
   0xf   : > { %v242_v1 = vld [vmem:[%s229_s24] sm:$0xff] }
  0x10   : > { %v243_v3 = vmul.f32 5.656854, %v242_v1 }
  0x12   : > { %v245_v4 = vadd.f32 %v244_v2, %v243_v3 }
  0x14   : > { %v246_v5 = vpack.c.bf16 %v245_v4, %v245_v4 }
  0x16   : > { %381 = vmatmul.msk.bf16.vlgmr.msra.gmra.mxu0 %vm259_vm0, %v246_v5 }
  0x93   : > { %v272_v7 = vpop.f32.mrf.mxu0 }
  0x94   : > { %v273_v8 = vadd.f32 %v409_v6, %v272_v7 }
  0x96   : > { %v276_v9 = vpack.c.bf16 %v273_v8, %v273_v8 }
  0x98   : > { %278 = vst.msk [vmem:[%s240_s6] sm:$0xf] %vm277_vm1, %v276_v9 }
  0x9b   : > { %v274_v10 = vpop.f32.mrf.mxu0 }
  0x9c PF: > { %s14_s17 = sadd.s32 1, %s432_s17   ;;  %s503_s15 = smov %s428_s16 }
  0x9d   : > { %p11_p5 = scmp.ge.s32.totalorder %s14_s17, 4   ;;  %s504_s16 = smov %s506_s18 }
  0x9f   :  { %13 = sbr.rel (!%p11_p5) target bundleno = 2 (0x2), region = 69 }

// kernel: encoder_forward.10
= control target key start
LH: loop header
LB: loop body
LE: loop exit
PB: predicated region body
PF: predicated region fallthrough
CT: control target
= control target key end

     0   :  { %s508_s12 = smov 0   ;;  %s510_s13 = smov 0   ;;  %s550_s0 = inlined_call_operand.vmem [shape: bf16[2,8,32], index: 0, kind: input, shape index: {}]   ;;  %s551_s1 = inlined_call_operand.vmem [shape: bf16[32,96], index: 1, kind: input, shape index: {}]   ;;  %s552_s2 = inlined_call_operand.vmem [shape: f32[1,96], index: 2, kind: input, shape index: {}]   ;;  %s553_s3 = inlined_call_operand.vmem [shape: bf16[2,3,8,32], index: 3, kind: output, shape index: {}]  }
   0x1   :  { %s512_s14 = smov 0  }
   0x2 LB: > { %s32_s15 = sadd.s32 1, %s479_s13  ;;  %p414_p0 = scmp.ge.s32.totalorder %s483_s14, 1  ;;  %s483_s14 = sphi %s512_s14, %s13_s14   ;;  %s479_s13 = sphi %s510_s13, %s555_s13   ;;  %s475_s12 = sphi %s508_s12, %s554_s12  }
   0x3   : > { %p34_p1 = scmp.ge.s32.totalorder %s32_s15, 2  ;;  %p178_p2 = scmp.lt.s32.totalorder %s483_s14, 3 }
   0x5   : > { %s557_s15 = smov (%p34_p1, %s32_s15), 0  ;;  %p179_p3 = pnand %p414_p0, %p178_p2 }
   0x6   : > { %p215_p4 = scmp.lt.s32.totalorder (!%p179_p3), %s475_s12, 1  ;;  %s486_s30 = smov (!%p179_p3), 96  }
   0x7   : > { %182 = sbr.rel (%p179_p3) target bundleno = 284 (0x11c), region = 32  ;;  %s487_s4 = smov (!%p179_p3), 64  }
   0xc   : > { %v431_v0 = vld [vmem:[%s551_s1 + $0x8] sm:$0xff]  ;;  %vm244_vm0 = vcmask 785408   ;;  %v485_v1 = vmov 0.0   ;;  %v430_v2 = vld [vmem:[%s551_s1] sm:$0xff]  ;;  %s559_s12 = smov (!%p215_p4, %s475_s12), 1  ;;  %vm264_vm1 = vcmask 261120  }
   0xd   : > { %245 = vst.msk [vmem:[#allocation2] sm:$0xff] %vm244_vm0, %v485_v1  ;;  %274 = vmatpush.bf16.msra.mxu0 %v431_v0  ;;  %s415_s20 = sshll.u32 %s559_s12, 2  ;;  %v460_v7 = vld [vmem:[%s552_s2] ss:$0 sm:$0xff]  ;;  %s432_s26 = smul.u32 12, %s559_s12  ;;  %vm294_vm2 = vcmask 257024  }
   0xe   : > { %s224_s23 = scalar_lea.vmem %s550_s0, %s415_s20 }
   0xf   : > { %v247_v3 = vld [vmem:[%s224_s23] sm:$0xf]  ;;  %s238_s29 = scalar_lea.vmem %s553_s3, %s432_s26 }
  0x11   : > { %275 = vmatpush.bf16.msra.mxu0 %v430_v2 }
  0x14   : > { %425 = vmatmul.msk.bf16.vlgmr.msra.gmra.mxu0 %vm264_vm1, %v247_v3  ;;  %v246_v4 = vld [vmem:[#allocation2] sm:$0xff] }
  0x91   : > { %v277_v5 = vpop.f32.mrf.mxu0 }
  0x92   : > { %v281_v6 = vadd.f32 %v277_v5, %v246_v4 }
  0x94   : > { %283 = vst.msk [vmem:[#allocation2] sm:$0xff] %vm244_vm0, %v281_v6 }
  0x99   : > { %v279_v8 = vpop.f32.mrf.mxu0 }
  0x9b   : > { %v287_v9 = vld [vmem:[#allocation2] sm:$0xff] }
  0x9c   : > { %v292_v10 = vadd.f32 %v460_v7, %v287_v9 }
  0x9e   : > { %v293_v11 = vpack.c.bf16 %v292_v10, %v292_v10 }
  0xa0   : > { %297 = vrot.lane.b32.xlu0 %v293_v11, %s486_s30  ;;  %295 = vst.msk [vmem:[%s238_s29] sm:$0xf] %vm294_vm2, %v293_v11 }
  0xa8   : > { %302 = vrot.lane.b32.xlu0 %v293_v11, %s487_s4 }
 0x112   : > { %v298_v12 = vpop.permute.xlu0 %297 }
 0x113   : > { %426 = vst.msk [vmem:[%s238_s29 + $0x4] sm:$0xf] %vm294_vm2, %v298_v12 }
 0x11a   : > { %v303_v13 = vpop.permute.xlu0 %302 }
 0x11b   : > { %427 = vst.msk [vmem:[%s238_s29 + $0x8] sm:$0xf] %vm294_vm2, %v303_v13 }
 0x11c PF: > { %s13_s14 = sadd.s32 1, %s483_s14   ;;  %s554_s12 = smov %s479_s13 }
 0x11d   : > { %p10_p5 = scmp.ge.s32.totalorder %s13_s14, 4   ;;  %s555_s13 = smov %s557_s15 }
 0x11f   :  { %12 = sbr.rel (!%p10_p5) target bundleno = 2 (0x2), region = 75 }

// kernel: encoder_forward.11
= control target key start
LH: loop header
LB: loop body
LE: loop exit
PB: predicated region body
PF: predicated region fallthrough
CT: control target
= control target key end

     0   :  { %s797_s15 = smov 0   ;;  %s799_s16 = smov 0   ;;  %s898_s0 = inlined_call_operand.vmem [shape: bf16[2,3,8,32], index: 0, kind: input, shape index: {}, may-alias: {0,1,2}]   ;;  %s899_s1 = inlined_call_operand.vmem [shape: bf16[2,3,8,32], index: 1, kind: input, shape index: {}, may-alias: {0,1,2}]   ;;  %s900_s2 = inlined_call_operand.vmem [shape: bf16[2,3,8,32], index: 2, kind: input, shape index: {}, may-alias: {0,1,2}]   ;;  %s901_s3 = inlined_call_operand.vmem [shape: f32[2,1,8], index: 3, kind: input, shape index: {}]   ;;  %s902_s4 = inlined_call_operand.vmem [shape: bf16[2,8,32], index: 4, kind: output, shape index: {}]  }
   0x1   :  { %s801_s17 = smov 0  }
   0x2 LB: > { %s26_s18 = sadd.s32 1, %s759_s16  ;;  %p676_p0 = scmp.ge.s32.totalorder %s763_s17, 1  ;;  %s763_s17 = sphi %s801_s17, %s14_s17   ;;  %s759_s16 = sphi %s799_s16, %s906_s16   ;;  %s755_s15 = sphi %s797_s15, %s905_s15  }
   0x3   : > { %p28_p1 = scmp.ge.s32.totalorder %s26_s18, 2  ;;  %p211_p2 = scmp.lt.s32.totalorder %s763_s17, 3 }
   0x5   : > { %s908_s18 = smov (%p28_p1, %s26_s18), 0  ;;  %p212_p3 = pnand %p676_p0, %p211_p2 }
   0x6   : > { %p257_p4 = scmp.lt.s32.totalorder (!%p212_p3), %s755_s15, 1  ;;  %s765_s26 = smov (!%p212_p3), 112  }
   0x7   : > { %215 = sbr.rel (%p212_p3) target bundleno = 1081 (0x439), region = 36  ;;  %s766_s27 = smov (!%p212_p3), 104  }
   0x8   : > { %s768_s5 = smov (!%p212_p3), 120   ;;  %s769_s9 = smov (!%p212_p3), 8  }
   0x9   : > { %s770_s10 = smov (!%p212_p3), 16   ;;  %s771_s11 = smov (!%p212_p3), 24  }
   0xc   : > { %s910_s15 = smov (!%p257_p4, %s755_s15), 1  ;;  %vm295_vm0 = vcmask 64512   ;;  %v767_v9 = vmov 0   ;;  %vm335_vm3 = vcmask 1043456   ;;  %vm543_vm4 = vcmask 130048  }
   0xd   : > { %s818_s19 = smul.u32 12, %s910_s15  ;;  %s279_s30 = scalar_lea.vmem %s901_s3, %s910_s15  ;;  %vm545_vm5 = vcmask 195584   ;;  %vm548_vm6 = vcmask 257024  }
   0xe   : > { %v291_v8 = vld [vmem:[%s279_s30] sm:$0x1]  ;;  %s680_s12 = sshll.u32 %s910_s15, 2 }
   0xf   : > { %s610_s22 = scalar_lea.vmem %s899_s1, %s818_s19  ;;  %s264_s25 = scalar_lea.vmem %s898_s0, %s818_s19  ;;  %vm315_vm1 = vcmp.gt.f32.partialorder %v291_v8, 0.0 }
  0x10   : > { %v681_v0 = vld [vmem:[%s610_s22 + $0x4] sm:$0xf]  ;;  %v288_v1 = vld [vmem:[%s264_s25] sm:$0xf]  ;;  %v316_v10 = vsel %vm315_vm1, 1, %v767_v9  ;;  %s614_s8 = scalar_lea.vmem %s900_s2, %s818_s19  ;;  %s286_s19 = scalar_lea.vmem %s902_s4, %s680_s12 }
  0x11   : > { %v300_v2 = vsel %vm295_vm0, %v681_v0, 0  ;;  %v292_v3 = vunpack.c.l.bf16 %v288_v1  ;;  %v356_v6 = vunpack.c.l.b16 %v681_v0  ;;  %v317_v11 = vperm.slane %v316_v10, 0  ;;  %v682_v27 = vld [vmem:[%s614_s8 + $0x8] sm:$0xf] }
  0x12   : > { %309 = vmatpush.bf16.xpose.msra.mxu0 %v300_v2  ;;  %v337_v28 = vsel %vm335_vm3, %v682_v27, 0  ;;  %v393_v51 = vunpack.c.l.b16 %v682_v27 }
  0x13   : > { %v293_v4 = vmul.f32 0.35351563, %v292_v3  ;;  %v357_v7 = vpack.c.b16 %v356_v6, %v356_v6  ;;  %vm838_vm2 = vcmp.eq.s32.totalorder %v317_v11, 1  ;;  %346 = vmatpush.bf16.msra.mxu1 %v337_v28 }
  0x14   : > { %v394_v52 = vpack.c.b16 %v393_v51, %v393_v51 }
  0x15   : > { %v294_v5 = vpack.c.bf16 %v293_v4, %v293_v4  ;;  %418 = vrot.lane.b32.xlu2 %v357_v7, %s765_s26 }
  0x19   : > { %683 = vmatmul.msk.bf16.vlgmr.msra.gmra.mxu0 %vm295_vm0, %v294_v5 }
  0x1d   : > { %475 = vrot.lane.b32.xlu2 %v357_v7, %s766_s27 }
  0x25   : > { %416 = vrot.lane.b32.xlu2 %v294_v5, %s765_s26 }
  0x2d   : > { %473 = vrot.lane.b32.xlu2 %v294_v5, %s766_s27 }
  0x6f   : > { %v419_v17 = vpop.permute.xlu2 %418 }
  0x70   : > { %v424_v29 = vsel %vm295_vm0, %v419_v17, 0 }
  0x71   : > { %433 = vmatpush.bf16.xpose.msrb.mxu1 %v424_v29 }
  0x77   : > { %v476_v18 = vpop.permute.xlu2 %475 }
  0x78   : > { %v481_v23 = vsel %vm295_vm0, %v476_v18, 0 }
  0x79   : > { %490 = vmatpush.bf16.xpose.msrb.mxu0 %v481_v23 }
  0x7f   : > { %v417_v22 = vpop.permute.xlu2 %416 }
  0x87   : > { %v474_v26 = vpop.permute.xlu2 %473 }
  0x88   : > { %689 = vmatmul.msk.bf16.vlgmr.msrb.gmra.mxu0 %vm295_vm0, %v474_v26 }
  0x96   : > { %v311_v13 = vpop.f32.mrf.mxu0 }
  0x97   : > { %v319_v14 = vsel %vm838_vm2, %v311_v13, -1e+10 }
  0x98   : > { %v320_v15 = vsel %vm295_vm0, %v319_v14, -inf }
  0x99   : > { %321 = vmax.xlane.f32.xlu0 %v320_v15 }
  0x9e   : > { %v313_v16 = vpop.f32.mrf.mxu0 }
  0xad   : > { %358 = vrot.lane.b32.xlu0 %v357_v7, %s768_s5 }
 0x105   : > { %v492_v36 = vpop.f32.mrf.mxu0 }
 0x106   : > { %v496_v37 = vsel %vm838_vm2, %v492_v36, -1e+10 }
 0x107   : > { %v497_v38 = vsel %vm295_vm0, %v496_v37, -inf }
 0x10c   : > { %v322_v19 = vpop.xlane.xlu0 %321 }
 0x10d   : > { %v323_v20 = vsub.f32 %v319_v14, %v322_v19  ;;  %v494_v39 = vpop.f32.mrf.mxu0 }
 0x10f   : > { %v324_v21 = vmul.f32 1.442695, %v323_v20 }
 0x111   : > { %725 = vpow2.f32 %v324_v21 }
 0x117   : > { %v726_v24 = vpop.eup %725 }
 0x118   : > { %v326_v25 = vsel %vm295_vm0, %v726_v24, 0.0 }
 0x119   : > { %327 = vadd.xlane.f32.xlu1 %v326_v25 }
 0x11f   : > { %v359_v30 = vpop.permute.xlu0 %358 }
 0x120   : > { %v364_v31 = vsel %vm295_vm0, %v359_v30, 0 }
 0x121   : > { %373 = vmatpush.bf16.xpose.msra.mxu2 %v364_v31 }
 0x132   : > { %353 = vrot.lane.b32.xlu1 %v294_v5, %s768_s5 }
 0x15c   : > { %498 = vmax.xlane.f32.xlu1 %v497_v38 }
 0x18c   : > { %v328_v32 = vpop.xlane.xlu1 %327 }
 0x18d   : > { %727 = vrcp.f32 %v328_v32 }
 0x193   : > { %v728_v33 = vpop.eup %727 }
 0x194   : > { %v330_v34 = vmul.f32 %v728_v33, %v726_v24 }
 0x196   : > { %v331_v35 = vpack.c.bf16 %v330_v34, %v330_v34 }
 0x198   : > { %684 = vmatmul.msk.bf16.vlgmr.msra.gmra.mxu1 %vm295_vm0, %v331_v35 }
 0x1a4   : > { %v354_v40 = vpop.permute.xlu1 %353 }
 0x1a5   : > { %685 = vmatmul.msk.bf16.vlgmr.msra.gmra.mxu2 %vm295_vm0, %v354_v40 }
 0x1a8   : > { %687 = vmatmul.msk.bf16.vlgmr.msrb.gmra.mxu1 %vm295_vm0, %v417_v22 }
 0x1cf   : > { %v499_v55 = vpop.xlane.xlu1 %498 }
 0x1d0   : > { %v500_v59 = vsub.f32 %v496_v37, %v499_v55 }
 0x1d2   : > { %v501_v61 = vmul.f32 1.442695, %v500_v59 }
 0x215   : > { %v863_v41 = vpop.f32.mrf.mxu1 }
 0x21d   : > { %v350_v42 = vpop.f32.mrf.mxu1 }
 0x225   : > { %v435_v43 = vpop.f32.mrf.mxu1 }
 0x226   : > { %v439_v44 = vsel %vm838_vm2, %v435_v43, -1e+10 }
 0x227   : > { %v440_v45 = vsel %vm295_vm0, %v439_v44, -inf }
 0x228   : > { %441 = vmax.xlane.f32.xlu2 %v440_v45  ;;  %v375_v46 = vpop.f32.mrf.mxu2 }
 0x229   : > { %v379_v47 = vsel %vm838_vm2, %v375_v46, -1e+10 }
 0x22a   : > { %v380_v48 = vsel %vm295_vm0, %v379_v47, -inf }
 0x22b   : > { %381 = vmax.xlane.f32.xlu0 %v380_v48 }
 0x22d   : > { %v437_v49 = vpop.f32.mrf.mxu1 }
 0x230   : > { %v377_v50 = vpop.f32.mrf.mxu2 }
 0x240   : > { %395 = vrot.lane.b32.xlu2 %v394_v52, %s768_s5 }
 0x29b   : > { %v442_v53 = vpop.xlane.xlu2 %441 }
 0x29c   : > { %v443_v54 = vsub.f32 %v439_v44, %v442_v53 }
 0x29e   : > { %v444_v56 = vmul.f32 1.442695, %v443_v54  ;;  %v382_v57 = vpop.xlane.xlu0 %381 }
 0x29f   : > { %v383_v58 = vsub.f32 %v379_v47, %v382_v57 }
 0x2a0   : > { %729 = vpow2.f32 %v444_v56 }
 0x2a1   : > { %v384_v60 = vmul.f32 1.442695, %v383_v58 }
 0x2a3   : > { %731 = vpow2.f32 %v384_v60  ;;  %v396_v4 = vpop.permute.xlu2 %395 }
 0x2a4   : > { %733 = vpow2.f32 %v501_v61  ;;  %v401_v5 = vsel %vm335_vm3, %v396_v4, 0 }
 0x2a5   : > { %410 = vmatpush.bf16.msra.mxu3 %v401_v5 }
 0x2a6   : > { %v730_v62 = vpop.eup %729 }
 0x2a7   : > { %v446_v63 = vsel %vm295_vm0, %v730_v62, 0.0 }
 0x2a8   : > { %447 = vadd.xlane.f32.xlu1 %v446_v63 }
 0x2a9   : > { %v732_v0 = vpop.eup %731 }
 0x2aa   : > { %v386_v1 = vsel %vm295_vm0, %v732_v0, 0.0  ;;  %v734_v2 = vpop.eup %733 }
 0x2ab   : > { %387 = vadd.xlane.f32.xlu0 %v386_v1  ;;  %v503_v3 = vsel %vm295_vm0, %v734_v2, 0.0 }
 0x2b3   : > { %504 = vadd.xlane.f32.xlu0 %v503_v3 }
 0x2c1   : > { %452 = vrot.lane.b32.xlu1 %v394_v52, %s765_s26 }
 0x2c7   : > { %509 = vrot.lane.b32.xlu0 %v394_v52, %s766_s27 }
 0x31b   : > { %v448_v9 = vpop.xlane.xlu1 %447 }
 0x31e   : > { %v388_v6 = vpop.xlane.xlu0 %387 }
 0x31f   : > { %735 = vrcp.f32 %v388_v6 }
 0x320   : > { %737 = vrcp.f32 %v448_v9 }
 0x325   : > { %v736_v7 = vpop.eup %735 }
 0x326   : > { %v390_v8 = vmul.f32 %v736_v7, %v732_v0  ;;  %v505_v11 = vpop.xlane.xlu0 %504  ;;  %v738_v12 = vpop.eup %737 }
 0x327   : > { %739 = vrcp.f32 %v505_v11  ;;  %v450_v14 = vmul.f32 %v738_v12, %v730_v62 }
 0x328   : > { %v391_v10 = vpack.c.bf16 %v390_v8, %v390_v8 }
 0x329   : > { %v451_v18 = vpack.c.bf16 %v450_v14, %v450_v14 }
 0x32a   : > { %686 = vmatmul.msk.bf16.vlgmr.msra.gmra.mxu3 %vm295_vm0, %v391_v10 }
 0x32d   : > { %v740_v16 = vpop.eup %739 }
 0x32e   : > { %v507_v17 = vmul.f32 %v740_v16, %v734_v2 }
 0x330   : > { %v508_v21 = vpack.c.bf16 %v507_v17, %v507_v17 }
 0x333   : > { %v453_v13 = vpop.permute.xlu1 %452 }
 0x334   : > { %v458_v15 = vsel %vm335_vm3, %v453_v13, 0 }
 0x335   : > { %467 = vmatpush.bf16.msrb.mxu3 %v458_v15 }
 0x339   : > { %v510_v19 = vpop.permute.xlu0 %509 }
 0x33a   : > { %688 = vmatmul.msk.bf16.vlgmr.msrb.gmra.mxu3 %vm295_vm0, %v451_v18  ;;  %v515_v20 = vsel %vm335_vm3, %v510_v19, 0 }
 0x33b   : > { %524 = vmatpush.bf16.msrb.mxu2 %v515_v20 }
 0x33e   : > { %690 = vmatmul.msk.bf16.vlgmr.msrb.gmra.mxu2 %vm295_vm0, %v508_v21 }
 0x3ad   : > { %v412_v22 = vpop.f32.mrf.mxu3 }
 0x3ae   : > { %531 = vrot.lane.b32.xlu2 %v412_v22, %s769_s9 }
 0x3b5   : > { %v414_v23 = vpop.f32.mrf.mxu3 }
 0x3bd   : > { %v469_v24 = vpop.f32.mrf.mxu3 }
 0x3be   : > { %535 = vrot.lane.b32.xlu2 %v469_v24, %s770_s10 }
 0x3c1   : > { %v526_v25 = vpop.f32.mrf.mxu2 }
 0x3c2   : > { %539 = vrot.lane.b32.xlu0 %v526_v25, %s771_s11 }
 0x3c5   : > { %v471_v26 = vpop.f32.mrf.mxu3 }
 0x3c9   : > { %v528_v27 = vpop.f32.mrf.mxu2 }
 0x408   : > { %v532_v28 = vpop.permute.xlu2 %531 }
 0x409   : > { %v542_v30 = vsel %vm295_vm0, %v863_v41, %v532_v28 }
 0x418   : > { %v536_v29 = vpop.permute.xlu2 %535 }
 0x419   : > { %v544_v31 = vsel %vm543_vm4, %v542_v30, %v536_v29 }
 0x434   : > { %v540_v32 = vpop.permute.xlu0 %539 }
 0x435   : > { %v546_v33 = vsel %vm545_vm5, %v544_v31, %v540_v32 }
 0x436   : > { %v547_v34 = vpack.c.bf16 %v546_v33, %v546_v33 }
 0x438   : > { %549 = vst.msk [vmem:[%s286_s19] sm:$0xf] %vm548_vm6, %v547_v34 }
 0x439 PF: > { %s14_s17 = sadd.s32 1, %s763_s17   ;;  %s905_s15 = smov %s759_s16 }
 0x43a   : > { %p11_p5 = scmp.ge.s32.totalorder %s14_s17, 4   ;;  %s906_s16 = smov %s908_s18 }
 0x43c   :  { %13 = sbr.rel (!%p11_p5) target bundleno = 2 (0x2), region = 75 }

// kernel: encoder_forward.12
= control target key start
LH: loop header
LB: loop body
LE: loop exit
PB: predicated region body
PF: predicated region fallthrough
CT: control target
= control target key end

     0   :  { %s592_s21 = smov 0   ;;  %s594_s22 = smov 0   ;;  %s651_s0 = inlined_call_operand.vmem [shape: bf16[2,8,32], index: 0, kind: input, shape index: {}]   ;;  %s652_s1 = inlined_call_operand.vmem [shape: bf16[32,32], index: 1, kind: input, shape index: {}]   ;;  %s653_s2 = inlined_call_operand.vmem [shape: f32[1,32], index: 2, kind: input, shape index: {}]   ;;  %s654_s3 = inlined_call_operand.vmem [shape: bf16[2,8,32], index: 3, kind: input, shape index: {}]   ;;  %s655_s4 = inlined_call_operand.vmem [shape: f32[1,32], index: 4, kind: input, shape index: {}]   ;;  %s656_s5 = inlined_call_operand.vmem [shape: f32[1,32], index: 5, kind: input, shape index: {}]   ;;  %s657_s6 = inlined_call_operand.vmem [shape: bf16[2,8,32], index: 6, kind: output, shape index: {}]  }
   0x1   :  { %s596_s23 = smov 0  }
   0x2 LB: > { %s28_s24 = sadd.s32 1, %s550_s22  ;;  %p483_p0 = scmp.ge.s32.totalorder %s554_s23, 1  ;;  %s554_s23 = sphi %s596_s23, %s16_s23   ;;  %s550_s22 = sphi %s594_s22, %s659_s22   ;;  %s546_s21 = sphi %s592_s21, %s658_s21  }
   0x3   : > { %p30_p1 = scmp.ge.s32.totalorder %s28_s24, 2  ;;  %p244_p2 = scmp.lt.s32.totalorder %s554_s23, 3 }
   0x5   : > { %s661_s24 = smov (%p30_p1, %s28_s24), 0  ;;  %p245_p3 = pnand %p483_p0, %p244_p2 }
   0x6   : > { %p285_p4 = scmp.lt.s32.totalorder (!%p245_p3), %s546_s21, 1 }
   0x7   : > { %248 = sbr.rel (%p245_p3) target bundleno = 421 (0x1a5), region = 44 }
   0xc   : > { %v499_v0 = vld [vmem:[%s652_s1 + $0x8] sm:$0xff]  ;;  %v498_v1 = vld [vmem:[%s652_s1] sm:$0xff]  ;;  %s663_s21 = smov (!%p285_p4, %s546_s21), 1  ;;  %vm328_vm0 = vcmask 261120   ;;  %v556_v11 = vmov 32.0   ;;  %vm388_vm5 = vcmask 257024  }
   0xd   : > { %338 = vmatpush.bf16.msra.mxu0 %v499_v0  ;;  %s616_s29 = sshll.u32 %s663_s21, 2  ;;  %v525_v4 = vld [vmem:[%s653_s2] ss:$0 sm:$0xff]  ;;  %528 = vrcp.f32 %v556_v11 }
   0xe   : > { %s291_s8 = scalar_lea.vmem %s651_s0, %s616_s29  ;;  %s298_s11 = scalar_lea.vmem %s654_s3, %s616_s29  ;;  %v526_v32 = vld [vmem:[%s655_s4] ss:$0 sm:$0xff] }
   0xf   : > { %v307_v2 = vld [vmem:[%s291_s8] sm:$0xf]  ;;  %s305_s20 = scalar_lea.vmem %s657_s6, %s616_s29 }
  0x10   : > { %v345_v3 = vld [vmem:[%s298_s11] sm:$0xf] }
  0x11   : > { %339 = vmatpush.bf16.msra.mxu0 %v498_v1  ;;  %v346_v5 = vunpack.c.l.bf16 %v345_v3  ;;  %v527_v34 = vld [vmem:[%s656_s5] ss:$0 sm:$0xff] }
  0x13   : > { %v529_v12 = vpop.eup %528 }
  0x14   : > { %495 = vmatmul.msk.bf16.vlgmr.msra.gmra.mxu0 %vm328_vm0, %v307_v2  ;;  %v352_v13 = vmul.f32 32.0, %v529_v12  ;;  %vm356_vm1 = vweird.f32 %v529_v12 }
  0x16   : > { %v353_v14 = vsub.f32 1.0, %v352_v13 }
  0x18   : > { %v354_v15 = vmul.f32 %v529_v12, %v353_v14 }
  0x1a   : > { %v355_v16 = vadd.f32 %v529_v12, %v354_v15 }
  0x1c   : > { %v357_v17 = vsel %vm356_vm1, %v529_v12, %v355_v16 }
  0x91   : > { %v341_v6 = vpop.f32.mrf.mxu0 }
  0x92   : > { %v342_v7 = vadd.f32 %v525_v4, %v341_v6 }
  0x94   : > { %v347_v8 = vadd.f32 %v346_v5, %v342_v7 }
  0x96   : > { %v348_v9 = vsel %vm328_vm0, %v347_v8, 0.0 }
  0x97   : > { %349 = vadd.xlane.f32.xlu0 %v348_v9 }
  0x99   : > { %v343_v10 = vpop.f32.mrf.mxu0 }
 0x10a   : > { %v350_v18 = vpop.xlane.xlu0 %349 }
 0x10b   : > { %v358_v19 = vmul.f32 %v357_v17, %v350_v18 }
 0x10d   : > { %v359_v20 = vsub.f32 %v347_v8, %v358_v19 }
 0x10f   : > { %v360_v21 = vmul.f32 %v359_v20, %v359_v20 }
 0x111   : > { %v361_v22 = vsel %vm328_vm0, %v360_v21, 0.0 }
 0x112   : > { %362 = vadd.xlane.f32.xlu0 %v361_v22 }
 0x185   : > { %v363_v23 = vpop.xlane.xlu0 %362 }
 0x186   : > { %v364_v24 = vmul.f32 %v363_v23, %v357_v17 }
 0x188   : > { %v365_v25 = vadd.f32 1e-05, %v364_v24 }
 0x18a   : > { %530 = vrsqrt.f32 %v365_v25  ;;  %vm372_vm3 = vweird.f32 %v365_v25 }
 0x190   : > { %v531_v26 = vpop.eup %530 }
 0x191   : > { %v367_v27 = vmul.f32 %v531_v26, %v365_v25  ;;  %vm373_vm2 = vweird.f32 %v531_v26 }
 0x192   : > { %vm374_vm4 = vmor %vm372_vm3, %vm373_vm2 }
 0x193   : > { %v368_v28 = vmul.f32 %v531_v26, %v367_v27 }
 0x195   : > { %v369_v29 = vmul.f32 0.5, %v368_v28 }
 0x197   : > { %v370_v30 = vsub.f32 1.5, %v369_v29 }
 0x199   : > { %v371_v31 = vmul.f32 %v531_v26, %v370_v30 }
 0x19b   : > { %v375_v33 = vsel %vm374_vm4, %v531_v26, %v371_v31 }
 0x19c   : > { %v376_v35 = vmul.f32 %v375_v33, %v359_v20 }
 0x19e   : > { %v381_v36 = vmul.f32 %v526_v32, %v376_v35 }
 0x1a0   : > { %v386_v37 = vadd.f32 %v527_v34, %v381_v36 }
 0x1a2   : > { %v387_v38 = vpack.c.bf16 %v386_v37, %v386_v37 }
 0x1a4   : > { %389 = vst.msk [vmem:[%s305_s20] sm:$0xf] %vm388_vm5, %v387_v38 }
 0x1a5 PF: > { %s16_s23 = sadd.s32 1, %s554_s23   ;;  %s658_s21 = smov %s550_s22 }
 0x1a6   : > { %p13_p5 = scmp.ge.s32.totalorder %s16_s23, 4   ;;  %s659_s22 = smov %s661_s24 }
 0x1a8   :  { %15 = sbr.rel (!%p13_p5) target bundleno = 2 (0x2), region = 77 }

// kernel: encoder_forward.13
= control target key start
LH: loop header
LB: loop body
LE: loop exit
PB: predicated region body
PF: predicated region fallthrough
CT: control target
= control target key end

     0   :  { %s782_s24 = smov 0   ;;  %s784_s25 = smov 0   ;;  %s857_s0 = inlined_call_operand.vmem [shape: bf16[2,8,32], index: 0, kind: input, shape index: {}]   ;;  %s858_s1 = inlined_call_operand.vmem [shape: bf16[32,64], index: 1, kind: input, shape index: {}]   ;;  %s859_s2 = inlined_call_operand.vmem [shape: f32[1,64], index: 2, kind: input, shape index: {}]   ;;  %s860_s3 = inlined_call_operand.vmem [shape: bf16[64,32], index: 3, kind: input, shape index: {}]   ;;  %s861_s4 = inlined_call_operand.vmem [shape: f32[1,32], index: 4, kind: input, shape index: {}]   ;;  %s862_s5 = inlined_call_operand.vmem [shape: f32[1,32], index: 5, kind: input, shape index: {}]   ;;  %s863_s6 = inlined_call_operand.vmem [shape: f32[1,32], index: 6, kind: input, shape index: {}]   ;;  %s864_s7 = inlined_call_operand.vmem [shape: bf16[2,8,32], index: 7, kind: output, shape index: {}]  }
   0x1   :  { %s786_s26 = smov 0  }
   0x2 LB: > { %s36_s27 = sadd.s32 1, %s734_s25  ;;  %p645_p0 = scmp.ge.s32.totalorder %s738_s26, 1  ;;  %s738_s26 = sphi %s786_s26, %s17_s26   ;;  %s734_s25 = sphi %s784_s25, %s866_s25   ;;  %s730_s24 = sphi %s782_s24, %s865_s24  }
   0x3   : > { %p38_p1 = scmp.ge.s32.totalorder %s36_s27, 2  ;;  %p290_p2 = scmp.lt.s32.totalorder %s738_s26, 3 }
   0x5   : > { %s868_s27 = smov (%p38_p1, %s36_s27), 0  ;;  %p291_p3 = pnand %p645_p0, %p290_p2 }
   0x6   : > { %p338_p4 = scmp.lt.s32.totalorder (!%p291_p3), %s730_s24, 1 }
   0x7   : > { %294 = sbr.rel (%p291_p3) target bundleno = 563 (0x233), region = 48 }
   0xc   : > { %v677_v0 = vld [vmem:[%s858_s1 + $0x8] sm:$0xff]  ;;  %v681_v1 = vld [vmem:[%s860_s3 + $0x18] sm:$0xff]  ;;  %v676_v2 = vld [vmem:[%s858_s1] sm:$0xff]  ;;  %s870_s24 = smov (!%p338_p4, %s730_s24), 1  ;;  %vm370_vm0 = vcmask 261120   ;;  %v740_v7 = vmov 0.0  }
   0xd   : > { %403 = vmatpush.bf16.msra.mxu0 %v677_v0  ;;  %453 = vmatpush.bf16.msra.mxu1 %v681_v1  ;;  %v680_v3 = vld [vmem:[%s860_s3 + $0x10] sm:$0xff]  ;;  %s646_s13 = sshll.u32 %s870_s24, 2  ;;  %v679_v5 = vld [vmem:[%s860_s3 + $0x8] sm:$0xff]  ;;  %v678_v6 = vld [vmem:[%s860_s3] sm:$0xff]  ;;  %371 = vst.msk [vmem:[#allocation2] sm:$0xff] %vm370_vm0, %v740_v7  ;;  %vm445_vm1 = vcmask 523264  }
   0xe   : > { %s344_s16 = scalar_lea.vmem %s857_s0, %s646_s13  ;;  %v708_v8 = vld [vmem:[%s859_s2] ss:$0 sm:$0xff]  ;;  %v741_v25 = vmov 32.0   ;;  %s364_s12 = scalar_lea.vmem %s864_s7, %s646_s13  ;;  %vm516_vm6 = vcmask 257024  }
   0xf   : > { %v372_v4 = vld [vmem:[%s344_s16] sm:$0xf]  ;;  %712 = vrcp.f32 %v741_v25 }
  0x10   : > { %v473_v17 = vld [vmem:[%s344_s16] sm:$0xf] }
  0x11   : > { %404 = vmatpush.bf16.msra.mxu0 %v676_v2  ;;  %454 = vmatpush.bf16.msra.mxu1 %v680_v3  ;;  %v709_v18 = vld [vmem:[%s861_s4] ss:$0 sm:$0xff]  ;;  %v474_v20 = vunpack.c.l.bf16 %v473_v17 }
  0x12   : > { %v710_v46 = vld [vmem:[%s862_s5] ss:$0 sm:$0xff] }
  0x13   : > { %v711_v48 = vld [vmem:[%s863_s6] ss:$0 sm:$0xff] }
  0x14   : > { %656 = vmatmul.msk.bf16.vlgmr.msra.gmra.mxu0 %vm370_vm0, %v372_v4  ;;  %v411_v14 = vld [vmem:[#allocation2] sm:$0xff] }
  0x15   : > { %455 = vmatpush.bf16.msra.mxu1 %v679_v5  ;;  %v713_v26 = vpop.eup %712 }
  0x16   : > { %v480_v27 = vmul.f32 32.0, %v713_v26  ;;  %vm484_vm2 = vweird.f32 %v713_v26 }
  0x18   : > { %v481_v28 = vsub.f32 1.0, %v480_v27 }
  0x19   : > { %456 = vmatpush.bf16.msra.mxu1 %v678_v6 }
  0x1a   : > { %v482_v29 = vmul.f32 %v713_v26, %v481_v28 }
  0x1c   : > { %v483_v30 = vadd.f32 %v713_v26, %v482_v29 }
  0x1e   : > { %v485_v31 = vsel %vm484_vm2, %v713_v26, %v483_v30 }
  0x91   : > { %v406_v9 = vpop.f32.mrf.mxu0 }
  0x92   : > { %v407_v10 = vadd.f32 %v708_v8, %v406_v9 }
  0x94   : > { %v410_v11 = vmax.f32 %v407_v10, 0.0 }
  0x96   : > { %v412_v12 = vpack.c.bf16 %v410_v11, %v410_v11 }
  0x98   : > { %673 = vmatmul.msk.bf16.vlgmr.msra.gmra.mxu1 %vm445_vm1, %v412_v12 }
  0x99   : > { %v408_v13 = vpop.f32.mrf.mxu0 }
 0x115   : > { %v458_v15 = vpop.f32.mrf.mxu1 }
 0x116   : > { %v462_v16 = vadd.f32 %v458_v15, %v411_v14 }
 0x118   : > { %463 = vst.msk [vmem:[#allocation2] sm:$0xff] %vm370_vm0, %v462_v16 }
 0x11d   : > { %v460_v19 = vpop.f32.mrf.mxu1 }
 0x11f   : > { %v467_v21 = vld [vmem:[#allocation2] sm:$0xff] }
 0x120   : > { %v472_v22 = vadd.f32 %v709_v18, %v467_v21 }
 0x122   : > { %v475_v23 = vadd.f32 %v474_v20, %v472_v22 }
 0x124   : > { %v476_v24 = vsel %vm370_vm0, %v475_v23, 0.0 }
 0x125   : > { %477 = vadd.xlane.f32.xlu0 %v476_v24 }
 0x198   : > { %v478_v32 = vpop.xlane.xlu0 %477 }
 0x199   : > { %v486_v33 = vmul.f32 %v485_v31, %v478_v32 }
 0x19b   : > { %v487_v34 = vsub.f32 %v475_v23, %v486_v33 }
 0x19d   : > { %v488_v35 = vmul.f32 %v487_v34, %v487_v34 }
 0x19f   : > { %v489_v36 = vsel %vm370_vm0, %v488_v35, 0.0 }
 0x1a0   : > { %490 = vadd.xlane.f32.xlu0 %v489_v36 }
 0x213   : > { %v491_v37 = vpop.xlane.xlu0 %490 }
 0x214   : > { %v492_v38 = vmul.f32 %v491_v37, %v485_v31 }
 0x216   : > { %v493_v39 = vadd.f32 1e-05, %v492_v38 }
 0x218   : > { %714 = vrsqrt.f32 %v493_v39  ;;  %vm500_vm4 = vweird.f32 %v493_v39 }
 0x21e   : > { %v715_v40 = vpop.eup %714 }
 0x21f   : > { %v495_v41 = vmul.f32 %v715_v40, %v493_v39  ;;  %vm501_vm3 = vweird.f32 %v715_v40 }
 0x220   : > { %vm502_vm5 = vmor %vm500_vm4, %vm501_vm3 }
 0x221   : > { %v496_v42 = vmul.f32 %v715_v40, %v495_v41 }
 0x223   : > { %v497_v43 = vmul.f32 0.5, %v496_v42 }
 0x225   : > { %v498_v44 = vsub.f32 1.5, %v497_v43 }
 0x227   : > { %v499_v45 = vmul.f32 %v715_v40, %v498_v44 }
 0x229   : > { %v503_v47 = vsel %vm502_vm5, %v715_v40, %v499_v45 }
 0x22a   : > { %v504_v49 = vmul.f32 %v503_v47, %v487_v34 }
 0x22c   : > { %v509_v50 = vmul.f32 %v710_v46, %v504_v49 }
 0x22e   : > { %v514_v51 = vadd.f32 %v711_v48, %v509_v50 }
 0x230   : > { %v515_v52 = vpack.c.bf16 %v514_v51, %v514_v51 }
 0x232   : > { %517 = vst.msk [vmem:[%s364_s12] sm:$0xf] %vm516_vm6, %v515_v52 }
 0x233 PF: > { %s17_s26 = sadd.s32 1, %s738_s26   ;;  %s865_s24 = smov %s734_s25 }
 0x234   : > { %p14_p5 = scmp.ge.s32.totalorder %s17_s26, 4   ;;  %s866_s25 = smov %s868_s27 }
 0x236   :  { %16 = sbr.rel (!%p14_p5) target bundleno = 2 (0x2), region = 95 }

// kernel: encoder_forward.15
= control target key start
LH: loop header
LB: loop body
LE: loop exit
PB: predicated region body
PF: predicated region fallthrough
CT: control target
= control target key end

     0   :  { %11 = vsyncpa [#allocation3], 0  ;;  %s1250_s0 = inlined_call_operand.vmem [shape: bf16[2,3,8,32], index: 0, kind: input, shape index: {}, may-alias: {0,1,2}]   ;;  %s1251_s1 = inlined_call_operand.vmem [shape: bf16[2,3,8,32], index: 1, kind: input, shape index: {}, may-alias: {0,1,2}]   ;;  %s1252_s2 = inlined_call_operand.vmem [shape: bf16[2,3,8,32], index: 2, kind: input, shape index: {}, may-alias: {0,1,2}]   ;;  %s1253_s3 = inlined_call_operand.vmem [shape: f32[2,1,8], index: 3, kind: input, shape index: {}]   ;;  %s1254_s4 = inlined_call_operand.vmem [shape: bf16[2,8,32], index: 4, kind: output, shape index: {0}]   ;;  %s1255_s5 = inlined_call_operand.hbm [shape: f32[2,4,8,8], index: 5, kind: output, shape index: {1}]  }
   0x1   :  { %13 = vsyncpa [#allocation3 + $0x1], 0  ;;  %s1057_s18 = smov 0   ;;  %s1059_s19 = smov 0  }
   0x2   :  { %s1061_s20 = smov 0   ;;  %s1063_s21 = smov 0  }
   0x3   :  { %s1065_s22 = smov 0   ;;  %s1067_s23 = smov 0  }
   0x4 LB: > { %s830_s24 = sadd.s32 4294967295, %s1017_s23   ;;  %s831_s25 = sadd.s32 4294967294, %s1017_s23   ;;  %s1017_s23 = sphi %s1067_s23, %s19_s23   ;;  %s1013_s22 = sphi %s1065_s22, %s1264_s22   ;;  %s1009_s21 = sphi %s1063_s21, %s1263_s21   ;;  %s1005_s20 = sphi %s1061_s20, %s1262_s20   ;;  %s1001_s19 = sphi %s1059_s19, %s1261_s19   ;;  %s997_s18 = sphi %s1057_s18, %s1260_s18  }
   0x5   : > { %s31_s26 = sadd.s32 1, %s1013_s22  ;;  %s174_s27 = sadd.s32 1, %s1005_s20 }
   0x6   : > { %p33_p0 = scmp.ge.s32.totalorder %s31_s26, 2  ;;  %p184_p1 = scmp.ne.s32.totalorder %s1005_s20, %s1001_s19 }
   0x7   : > { %p185_p2 = scmp.eq.s32.totalorder %s830_s24, 1  ;;  %p190_p3 = scmp.ne.s32.totalorder %s1001_s19, %s997_s18 }
   0x8   : > { %s1266_s26 = smov (%p33_p0, %s31_s26), 0  ;;  %p191_p5 = scmp.eq.s32.totalorder %s831_s25, 1 }
   0x9   : > { %p1097_p4 = por %p185_p2, %p184_p1  ;;  %s169_s29 = ssub.s32 %s1013_s22, %s1266_s26 }
   0xa   : > { %p834_p6 = scmp.ge.s32.totalorder %s1017_s23, 1  ;;  %p172_p7 = scmp.eq.s32.totalorder %s169_s29, 0 }
   0xb   : > { %p1104_p8 = por %p191_p5, %p190_p3  ;;  %p244_p9 = scmp.lt.s32.totalorder %s1017_s23, 3 }
   0xc   : > { %s1110_s6 = scalar_select %p172_p7, %s1005_s20, %s174_s27  }
   0xd   : > { %p245_p10 = pnand %p834_p6, %p244_p9 }
   0xe   : > { %p297_p11 = scmp.lt.s32.totalorder (!%p245_p10), %s1009_s21, 1  ;;  %s1019_s15 = smov (!%p245_p10), 120  }
   0xf   : > { %248 = sbr.rel (%p245_p10) target bundleno = 1095 (0x447), region = 36  ;;  %s1020_s16 = smov (!%p245_p10), 112  }
  0x10   : > { %s1021_s17 = smov (!%p245_p10), 104   ;;  %s1023_s13 = smov (!%p245_p10), 24  }
  0x14   : > { %s1114_s7 = scalar_select %p297_p11, %s1009_s21, 1  ;;  %vm335_vm0 = vcmask 64512   ;;  %v1022_v11 = vmov 0   ;;  %vm388_vm3 = vcmask 1043456  }
  0x16   : > { %s1117_s8 = smul.u32 12, %s1114_s7  ;;  %s319_s27 = scalar_lea.vmem %s1253_s3, %s1114_s7 }
  0x17   : > { %v331_v8 = vld [vmem:[%s319_s27] sm:$0x1] }
  0x18   : > { %s748_s11 = scalar_lea.vmem %s1251_s1, %s1117_s8  ;;  %s304_s14 = scalar_lea.vmem %s1250_s0, %s1117_s8  ;;  %vm355_vm1 = vcmp.gt.f32.partialorder %v331_v8, 0.0 }
  0x19   : > { %v840_v0 = vld [vmem:[%s748_s11 + $0x4] sm:$0xf]  ;;  %v328_v1 = vld [vmem:[%s304_s14] sm:$0xf]  ;;  %v356_v12 = vsel %vm355_vm1, 1, %v1022_v11  ;;  %s752_s10 = scalar_lea.vmem %s1252_s2, %s1117_s8  ;;  %s294_s8 = sand.u32 1, %s1001_s19  }
  0x1a   : > { %v340_v2 = vsel %vm335_vm0, %v840_v0, 0  ;;  %v410_v3 = vunpack.c.l.b16 %v840_v0  ;;  %v332_v4 = vunpack.c.l.bf16 %v328_v1  ;;  %v357_v14 = vperm.slane %v356_v12, 0  ;;  %v841_v33 = vld [vmem:[%s752_s10 + $0x8] sm:$0xf]  ;;  %s835_s11 = sshll.u32 %s294_s8, 5  ;;  %s1024_s14 = smov 8  }
  0x1b   : > { %349 = vmatpush.bf16.xpose.msra.mxu0 %v340_v2  ;;  %v390_v35 = vsel %vm388_vm3, %v841_v33, 0  ;;  %v460_v49 = vunpack.c.l.b16 %v841_v33  ;;  %s1171_s12 = scalar_lea.vmem [#allocation2], %s835_s11  ;;  %s657_s29 = scalar_lea.sflag [#allocation3], %s294_s8 }
  0x1c   : > { %v411_v5 = vpack.c.b16 %v410_v3, %v410_v3  ;;  %v333_v6 = vmul.f32 0.35351563, %v332_v4  ;;  %vm1140_vm2 = vcmp.eq.s32.totalorder %v357_v14, 1  ;;  %399 = vmatpush.bf16.msra.mxu1 %v390_v35  ;;  %s673_s25 = sshll.u32 %s1171_s12, 4  ;;  %s674_s25 = int_to_ptr.vmem [resolvable:$true] %s673_s25 }
  0x1d   : > { %v1165_v54 = vpack.c.b16 %v460_v49, %v460_v49 }
  0x1e   : > { %v334_v7 = vpack.c.bf16 %v333_v6, %v333_v6  ;;  %412 = vrot.lane.b32.xlu1 %v411_v5, %s1019_s15  ;;  %487 = vrot.lane.b32.xlu2 %v411_v5, %s1020_s16 }
  0x22   : > { %842 = vmatmul.msk.bf16.vlgmr.msra.gmra.mxu0 %vm335_vm0, %v334_v7 }
  0x26   : > { %407 = vrot.lane.b32.xlu1 %v334_v7, %s1019_s15  ;;  %559 = vrot.lane.b32.xlu2 %v411_v5, %s1021_s17 }
  0x2e   : > { %557 = vrot.lane.b32.xlu1 %v334_v7, %s1021_s17 }
  0x78   : > { %v488_v20 = vpop.permute.xlu2 %487 }
  0x79   : > { %v493_v34 = vsel %vm335_vm0, %v488_v20, 0 }
  0x7a   : > { %502 = vmatpush.bf16.xpose.msrb.mxu1 %v493_v34 }
  0x80   : > { %v560_v21 = vpop.permute.xlu2 %559 }
  0x81   : > { %v565_v22 = vsel %vm335_vm0, %v560_v21, 0 }
  0x82   : > { %574 = vmatpush.bf16.xpose.msrb.mxu0 %v565_v22 }
  0x90   : > { %v413_v9 = vpop.permute.xlu1 %412 }
  0x91   : > { %v418_v10 = vsel %vm335_vm0, %v413_v9, 0 }
  0x92   : > { %427 = vmatpush.bf16.xpose.msra.mxu2 %v418_v10 }
  0x98   : > { %v408_v13 = vpop.permute.xlu1 %407 }
  0x99   : > { %844 = vmatmul.msk.bf16.vlgmr.msra.gmra.mxu2 %vm335_vm0, %v408_v13 }
  0x9f   : > { %v351_v16 = vpop.f32.mrf.mxu0 }
  0xa0   : > { %v359_v17 = vsel %vm1140_vm2, %v351_v16, -1e+10  ;;  %v558_v23 = vpop.permute.xlu1 %557 }
  0xa1   : > { %v360_v18 = vsel %vm335_vm0, %v359_v17, -inf  ;;  %850 = vmatmul.msk.bf16.vlgmr.msrb.gmra.mxu0 %vm335_vm0, %v558_v23 }
  0xa2   : > { %361 = vmax.xlane.f32.xlu0 %v360_v18 }
  0xa7   : > { %v353_v19 = vpop.f32.mrf.mxu0 }
 0x115   : > { %v362_v24 = vpop.xlane.xlu0 %361 }
 0x116   : > { %v363_v25 = vsub.f32 %v359_v17, %v362_v24 }
 0x118   : > { %v364_v26 = vmul.f32 1.442695, %v363_v25 }
 0x11a   : > { %923 = vpow2.f32 %v364_v26 }
 0x11c   : > { %v429_v27 = vpop.f32.mrf.mxu2 }
 0x11d   : > { %v433_v28 = vsel %vm1140_vm2, %v429_v27, -1e+10 }
 0x11e   : > { %v434_v29 = vsel %vm335_vm0, %v433_v28, -inf  ;;  %v576_v36 = vpop.f32.mrf.mxu0 }
 0x11f   : > { %435 = vmax.xlane.f32.xlu2 %v434_v29  ;;  %v580_v37 = vsel %vm1140_vm2, %v576_v36, -1e+10 }
 0x120   : > { %v924_v30 = vpop.eup %923  ;;  %v581_v39 = vsel %vm335_vm0, %v580_v37, -inf }
 0x121   : > { %v366_v31 = vsel %vm335_vm0, %v924_v30, 0.0 }
 0x122   : > { %367 = vadd.xlane.f32.xlu0 %v366_v31 }
 0x124   : > { %v431_v32 = vpop.f32.mrf.mxu2 }
 0x126   : > { %v578_v43 = vpop.f32.mrf.mxu0 }
 0x136   : > { %485 = vrot.lane.b32.xlu0 %v334_v7, %s1020_s16 }
 0x160   : > { %582 = vmax.xlane.f32.xlu0 %v581_v39 }
 0x174   : > { %606 = vrot.lane.b32.xlu0 %v1165_v54, %s1021_s17 }
 0x192   : > { %v436_v38 = vpop.xlane.xlu2 %435 }
 0x193   : > { %v437_v40 = vsub.f32 %v433_v28, %v436_v38 }
 0x195   : > { %v368_v41 = vpop.xlane.xlu0 %367  ;;  %v438_v42 = vmul.f32 1.442695, %v437_v40 }
 0x196   : > { %925 = vrcp.f32 %v368_v41  ;;  %v380_v50 = vand.u32 2147483648, %v368_v41  ;;  %v378_v52 = vand.u32 2147483647, %v368_v41  ;;  %vm374_vm5 = vweird.f32 %v368_v41 }
 0x197   : > { %927 = vpow2.f32 %v438_v42 }
 0x198   : > { %v381_v55 = vor.u32 1.1754944e-38, %v380_v50  ;;  %vm379_vm7 = vcmp.eq.f32.partialorder %v378_v52, 8.507059e+37 }
 0x19c   : > { %v926_v44 = vpop.eup %925 }
 0x19d   : > { %v928_v45 = vpop.eup %927  ;;  %v370_v46 = vmul.f32 %v926_v44, %v368_v41  ;;  %vm375_vm4 = vweird.f32 %v926_v44 }
 0x19e   : > { %v440_v47 = vsel %vm335_vm0, %v928_v45, 0.0  ;;  %vm376_vm6 = vmor %vm374_vm5, %vm375_vm4 }
 0x19f   : > { %v371_v48 = vsub.f32 1.0, %v370_v46  ;;  %441 = vadd.xlane.f32.xlu2 %v440_v47 }
 0x1a1   : > { %v372_v51 = vmul.f32 %v926_v44, %v371_v48 }
 0x1a3   : > { %v373_v53 = vadd.f32 %v926_v44, %v372_v51 }
 0x1a5   : > { %v377_v56 = vsel %vm376_vm6, %v926_v44, %v373_v53 }
 0x1a6   : > { %v382_v57 = vsel %vm379_vm7, %v381_v55, %v377_v56 }
 0x1a7   : > { %v383_v58 = vmul.f32 %v924_v30, %v382_v57 }
 0x1a8   : > { %v486_v60 = vpop.permute.xlu0 %485 }
 0x1a9   : > { %v384_v59 = vpack.c.bf16 %v383_v58, %v383_v58  ;;  %405 = vst.msk [vmem:[%s1171_s12] sm:$0xff] %vm335_vm0, %v383_v58 }
 0x1ab   : > { %843 = vmatmul.msk.bf16.vlgmr.msra.gmra.mxu1 %vm335_vm0, %v384_v59 }
 0x1bb   : > { %847 = vmatmul.msk.bf16.vlgmr.msrb.gmra.mxu1 %vm335_vm0, %v486_v60 }
 0x1d3   : > { %v583_v10 = vpop.xlane.xlu0 %582 }
 0x1d4   : > { %v584_v11 = vsub.f32 %v580_v37, %v583_v10 }
 0x1d6   : > { %v585_v13 = vmul.f32 1.442695, %v584_v11 }
 0x1e6   : > { %v607_v21 = vpop.permute.xlu0 %606 }
 0x1e7   : > { %v612_v22 = vsel %vm388_vm3, %v607_v21, 0 }
 0x1e8   : > { %621 = vmatpush.bf16.msrb.mxu2 %v612_v22 }
 0x212   : > { %v442_v61 = vpop.xlane.xlu2 %441 }
 0x213   : > { %929 = vrcp.f32 %v442_v61  ;;  %v454_v0 = vand.u32 2147483648, %v442_v61  ;;  %vm448_vm8 = vweird.f32 %v442_v61  ;;  %v452_v2 = vand.u32 2147483647, %v442_v61 }
 0x214   : > { %931 = vpow2.f32 %v585_v13 }
 0x215   : > { %v455_v4 = vor.u32 1.1754944e-38, %v454_v0  ;;  %vm453_vm11 = vcmp.eq.f32.partialorder %v452_v2, 8.507059e+37 }
 0x219   : > { %v930_v62 = vpop.eup %929 }
 0x21a   : > { %v444_v63 = vmul.f32 %v930_v62, %v442_v61  ;;  %vm449_vm9 = vweird.f32 %v930_v62  ;;  %v932_v18 = vpop.eup %931 }
 0x21b   : > { %vm450_vm10 = vmor %vm448_vm8, %vm449_vm9  ;;  %v587_v20 = vsel %vm335_vm0, %v932_v18, 0.0 }
 0x21c   : > { %v445_v1 = vsub.f32 1.0, %v444_v63 }
 0x21e   : > { %v446_v3 = vmul.f32 %v930_v62, %v445_v1 }
 0x220   : > { %v447_v5 = vadd.f32 %v930_v62, %v446_v3 }
 0x222   : > { %v451_v6 = vsel %vm450_vm10, %v930_v62, %v447_v5 }
 0x223   : > { %v456_v7 = vsel %vm453_vm11, %v455_v4, %v451_v6 }
 0x224   : > { %v1177_v8 = vmul.f32 %v928_v45, %v456_v7 }
 0x226   : > { %846 = vst.msk [vmem:[%s1171_s12 + $0x8] sm:$0xff] %vm335_vm0, %v1177_v8  ;;  %v458_v49 = vpack.c.bf16 %v1177_v8, %v1177_v8 }
 0x228   : > { %v1182_v9 = vpop.f32.mrf.mxu1 }
 0x230   : > { %v403_v12 = vpop.f32.mrf.mxu1 }
 0x238   : > { %v504_v14 = vpop.f32.mrf.mxu1 }
 0x239   : > { %v508_v16 = vsel %vm1140_vm2, %v504_v14, -1e+10 }
 0x23a   : > { %v509_v17 = vsel %vm335_vm0, %v508_v16, -inf }
 0x23b   : > { %510 = vmax.xlane.f32.xlu1 %v509_v17 }
 0x240   : > { %v506_v19 = vpop.f32.mrf.mxu1 }
 0x243   : > { %588 = vadd.xlane.f32.xlu1 %v587_v20 }
 0x25c   : > { %534 = vrot.lane.b32.xlu1 %v1165_v54, %s1020_s16 }
 0x2ae   : > { %v511_v23 = vpop.xlane.xlu1 %510 }
 0x2af   : > { %v512_v24 = vsub.f32 %v508_v16, %v511_v23 }
 0x2b1   : > { %v513_v25 = vmul.f32 1.442695, %v512_v24 }
 0x2b3   : > { %933 = vpow2.f32 %v513_v25 }
 0x2b6   : > { %v589_v15 = vpop.xlane.xlu1 %588 }
 0x2b7   : > { %935 = vrcp.f32 %v589_v15  ;;  %v601_v31 = vand.u32 2147483648, %v589_v15  ;;  %v599_v33 = vand.u32 2147483647, %v589_v15  ;;  %vm595_vm13 = vweird.f32 %v589_v15 }
 0x2b9   : > { %v934_v26 = vpop.eup %933  ;;  %v602_v35 = vor.u32 1.1754944e-38, %v601_v31  ;;  %vm600_vm15 = vcmp.eq.f32.partialorder %v599_v33, 8.507059e+37 }
 0x2ba   : > { %v515_v27 = vsel %vm335_vm0, %v934_v26, 0.0 }
 0x2bb   : > { %516 = vadd.xlane.f32.xlu2 %v515_v27 }
 0x2bd   : > { %v936_v28 = vpop.eup %935 }
 0x2be   : > { %v591_v29 = vmul.f32 %v936_v28, %v589_v15  ;;  %vm596_vm12 = vweird.f32 %v936_v28 }
 0x2bf   : > { %vm597_vm14 = vmor %vm595_vm13, %vm596_vm12 }
 0x2c0   : > { %v592_v30 = vsub.f32 1.0, %v591_v29 }
 0x2c2   : > { %v593_v32 = vmul.f32 %v936_v28, %v592_v30 }
 0x2c4   : > { %v594_v34 = vadd.f32 %v936_v28, %v593_v32 }
 0x2c6   : > { %v598_v36 = vsel %vm597_vm14, %v936_v28, %v594_v34 }
 0x2c7   : > { %v603_v37 = vsel %vm600_vm15, %v602_v35, %v598_v36 }
 0x2c8   : > { %v604_v38 = vmul.f32 %v932_v18, %v603_v37 }
 0x2ca   : > { %v605_v39 = vpack.c.bf16 %v604_v38, %v604_v38  ;;  %852 = vst.msk [vmem:[%s1171_s12 + $0x18] sm:$0xff] %vm335_vm0, %v604_v38 }
 0x2cc   : > { %851 = vmatmul.msk.bf16.vlgmr.msrb.gmra.mxu2 %vm335_vm0, %v605_v39 }
 0x2ce   : > { %v535_v41 = vpop.permute.xlu1 %534 }
 0x2cf   : > { %v540_v45 = vsel %vm388_vm3, %v535_v41, 0 }
 0x2d3   : > { %462 = vrot.lane.b32.xlu2 %v1165_v54, %s1019_s15  ;;  %s858_s15 = sshll.u32 %s1009_s21, 5 }
 0x2d4   : > { %s672_s24 = scalar_lea.hbm %s1255_s5, %s858_s15 }
 0x2d5   : > { %s675_s27 = sshll.u32 %s672_s24, 4  ;;  %s676_s27 = int_to_ptr.hbm [resolvable:$true] %s675_s27 }
 0x2d6   : > { %s953_s9 = sshra.s32 %s676_s27, 4  ;;  %s954_s9 = int_to_ptr.hbm [resolvable:$true] %s953_s9 }
 0x2d7   : > { %s955_s10 = scalar_lea.hbm %s954_s9, 32  ;;  %p960_p1 = scmp.lt.s32.totalorder %s954_s9, %s1255_s5 }
 0x2d8   : > { %p956_p12 = scmp.ne.s32.totalorder %s954_s9, %s955_s10 }
 0x2da   : > { %p957_p13 = pnand %p956_p12, %p1097_p4 }
 0x2dc   : > { %p958_p0 = pneg %p957_p13 }
 0x32e   : > { %v517_v40 = vpop.xlane.xlu2 %516 }
 0x32f   : > { %937 = vrcp.f32 %v517_v40  ;;  %v529_v48 = vand.u32 2147483648, %v517_v40  ;;  %v527_v51 = vand.u32 2147483647, %v517_v40  ;;  %vm523_vm2 = vweird.f32 %v517_v40 }
 0x331   : > { %v530_v53 = vor.u32 1.1754944e-38, %v529_v48 }
 0x335   : > { %v938_v42 = vpop.eup %937 }
 0x336   : > { %v519_v43 = vmul.f32 %v938_v42, %v517_v40  ;;  %v463_v44 = vpop.permute.xlu2 %462  ;;  %vm524_vm1 = vweird.f32 %v938_v42 }
 0x337   : > { %v468_v46 = vsel %vm388_vm3, %v463_v44, 0  ;;  %vm525_vm4 = vmor %vm523_vm2, %vm524_vm1  ;;  %vm528_vm3 = vcmp.eq.f32.partialorder %v527_v51, 8.507059e+37 }
 0x338   : > { %v520_v47 = vsub.f32 1.0, %v519_v43  ;;  %477 = vmatpush.bf16.msra.mxu3 %v468_v46 }
 0x33a   : > { %v521_v50 = vmul.f32 %v938_v42, %v520_v47 }
 0x33b   : > { %845 = vmatmul.msk.bf16.vlgmr.msra.gmra.mxu3 %vm335_vm0, %v458_v49 }
 0x33c   : > { %549 = vmatpush.bf16.msrb.mxu3 %v540_v45  ;;  %v522_v52 = vadd.f32 %v938_v42, %v521_v50 }
 0x33e   : > { %v526_v54 = vsel %vm525_vm4, %v938_v42, %v522_v52 }
 0x33f   : > { %v531_v55 = vsel %vm528_vm3, %v530_v53, %v526_v54 }
 0x340   : > { %v532_v56 = vmul.f32 %v934_v26, %v531_v55 }
 0x342   : > { %849 = vst.msk [vmem:[%s1171_s12 + $0x10] sm:$0xff] %vm335_vm0, %v532_v56  ;;  %v533_v57 = vpack.c.bf16 %v532_v56, %v532_v56 }
 0x34b   : > { %848 = vmatmul.msk.bf16.vlgmr.msrb.gmra.mxu3 %vm335_vm0, %v533_v57 }
 0x34f   : > { %v623_v58 = vpop.f32.mrf.mxu2 }
 0x350   : > { %638 = vrot.lane.b32.xlu1 %v623_v58, %s1023_s13  ;;  %s959_s13 = scalar_lea.hbm %s1255_s5, 64 }
 0x351   : > { %p961_p2 = scmp.lt.s32.totalorder %s959_s13, %s955_s10 }
 0x353   : > { %p962_p3 = por %p961_p2, %p960_p1 }
 0x355   : > { %p963_p5 = pnand %p962_p3, %p958_p0 }
 0x357   : > { %v625_v59 = vpop.f32.mrf.mxu2 }
 0x3be   : > { %v479_v60 = vpop.f32.mrf.mxu3 }
 0x3bf   : > { %630 = vrot.lane.b32.xlu2 %v479_v60, %s1024_s14 }
 0x3c6   : > { %v481_v61 = vpop.f32.mrf.mxu3 }
 0x3c7   : > { %966 = shalt.err (!%p963_p5)
}
 0x3c8   : > { %s1025_s8 = smov 128   ;;  %s1026_s12 = smov 16   ;;  %vm642_vm5 = vcmask 130048   ;;  %vm644_vm6 = vcmask 195584   ;;  %v639_v3 = vpop.permute.xlu1 %638  ;;  %vm647_vm7 = vcmask 257024  }
 0x3c9   : > { %860 = dma.vmem_to_hbm [thread:$0]  (%p1097_p4), %s674_s25, 512, %s676_s27, %s657_s29, %s1025_s8, %s1025_s8, %s1024_s14  }
 0x3ca   : > { %s839_s17 = sshll.u32 %s1114_s7, 2 }
 0x3cb   : > { %s326_s28 = scalar_lea.vmem %s1254_s4, %s839_s17 }
 0x3ce   : > { %v551_v62 = vpop.f32.mrf.mxu3 }
 0x3cf   : > { %634 = vrot.lane.b32.xlu0 %v551_v62, %s1026_s12 }
 0x3d6   : > { %v553_v63 = vpop.f32.mrf.mxu3 }
 0x419   : > { %v631_v0 = vpop.permute.xlu2 %630 }
 0x41a   : > { %v641_v1 = vsel %vm335_vm0, %v1182_v9, %v631_v0 }
 0x441   : > { %v635_v2 = vpop.permute.xlu0 %634 }
 0x442   : > { %v643_v4 = vsel %vm642_vm5, %v641_v1, %v635_v2 }
 0x443   : > { %v645_v5 = vsel %vm644_vm6, %v643_v4, %v639_v3 }
 0x444   : > { %v646_v6 = vpack.c.bf16 %v645_v5, %v645_v5 }
 0x446   : > { %648 = vst.msk [vmem:[%s326_s28] sm:$0xf] %vm647_vm7, %v646_v6 }
 0x447 PF: > { %p866_p4 = scmp.ge.s32.totalorder %s1017_s23, 2  ;;  %s700_s7 = sand.u32 1, %s997_s18  }
 0x448   : > { %s701_s14 = scalar_lea.sflag [#allocation3], %s700_s7 }
 0x449   : > { %p863_p6 = pnand %p866_p4, %p1104_p8 }
 0x44b   : > { %p864_p7 = pneg %p863_p6 }
 0x44d   : > { %992 = dma.done.wait (%p864_p7), %s701_s14, 512  }
 0x44e   : > { %994 = vsyncadd (%p864_p7), %s701_s14, 4294966784  ;;  %s19_s23 = sadd.s32 1, %s1017_s23   ;;  %s1260_s18 = smov %s1001_s19 }
 0x44f   : > { %p16_p9 = scmp.ge.s32.totalorder %s19_s23, 4   ;;  %s1261_s19 = smov %s1005_s20 }
 0x450   : > { %s1262_s20 = smov %s1110_s6  ;;  %s1263_s21 = smov %s1013_s22 }
 0x451   : > { %s1264_s22 = smov %s1266_s26  ;;  %18 = sbr.rel (!%p16_p9) target bundleno = 4 (0x4), region = 95 }
 0x456   :  { %707 = vsyncpa [#allocation3], 1 }
 0x457   :  { %709 = vsyncpa [#allocation3 + $0x1], 1 }

</bundles_post_ra>
